<compile_context>
chip_gen: v7x
topology: tpu7x:2x2x1
jax: 0.10.0
libtpu: 0.0.40
codegen_flags: <defaults>
</compile_context>

<pallas_src>
import functools

import jax
import jax.numpy as jnp
from jax.experimental import pallas as pl
from jax.experimental.pallas import tpu as pltpu


# ----------------------------------------------------------------------------
# Pallas kernel: sub-pixel transposed conv + bias + (fused input BN/LeakyReLU)
# + per-batch BN statistics.
# ----------------------------------------------------------------------------
def _shift_flat(x, off, cin, s, dtype):
    # Value at flattened spatial position p + off, zero-filled past the end.
    if off >= s:
        return jnp.zeros((cin, s), dtype)
    pad = jnp.zeros((cin, off), dtype)
    return jnp.concatenate([x[:, off:], pad], axis=1)


def convt_subpixel_kernel(*refs, W, fuse_in):
    if fuse_in:
        x_ref, w_ref, b_ref, sc_ref, sh_ref, y_ref, sum_ref, sq_ref = refs
    else:
        x_ref, w_ref, b_ref, y_ref, sum_ref, sq_ref = refs

    cin = x_ref.shape[1]
    s = x_ref.shape[2]                           # = H * W

    x = x_ref[0].astype(jnp.float32)             # (Cin, S), lane-dense

    if fuse_in:
        # Previous layer's BatchNorm scale/shift + LeakyReLU(0.01), fused into
        # this layer's load path (pointwise per channel, so it commutes with
        # the shifted-tap construction; edge padding stays exactly zero).
        xb = x * sc_ref[...] + sh_ref[...]       # (Cin,1) broadcast over lanes
        x = jnp.where(xb >= 0.0, xb, 0.01 * xb)

    # Column keep-mask: zero positions whose (c+1) neighbour crosses the right
    # edge (c == W-1).  Row shifts need no mask (flat shift runs off the end).
    col = jax.lax.broadcasted_iota(jnp.int32, (1, s), 1) % W
    keep = (col < (W - 1)).astype(jnp.float32)   # (1, S)

    x01 = _shift_flat(x, 1, cin, s, jnp.float32) * keep      # x[r,   c+1]
    x10 = _shift_flat(x, W, cin, s, jnp.float32)             # x[r+1, c  ]
    x11 = _shift_flat(x, W + 1, cin, s, jnp.float32) * keep  # x[r+1, c+1]

    xcat = jnp.concatenate([x, x01, x10, x11], axis=0)       # (4*Cin, S)

    # One MXU matmul: (4*Cout, 4*Cin) @ (4*Cin, S) -> all four output parities.
    acc = jnp.dot(w_ref[...], xcat, preferred_element_type=jnp.float32)
    acc = acc + b_ref[...]                                   # (4*Cout,1) bcast

    y_ref[0] = acc.astype(y_ref.dtype)                       # lane-dense store

    # Per-batch partial BN statistics (parity blocks and batch are combined in
    # the wrapper).  Per-batch partials keep the grid axis 'parallel'.
    sum_ref[0] = jnp.sum(acc, axis=1, keepdims=True)
    sq_ref[0] = jnp.sum(acc * acc, axis=1, keepdims=True)


def conv_subpixel_layer(x, wall, bias4, in_scale, in_shift, H, W, fuse_in):
    """x: (N, Cin, H*W) lane-dense -> (yp, sum, sumsq) with yp (N, 4*Cout, H*W)."""
    del H  # only W is needed inside the kernel
    N, Cin, S = x.shape
    Cout4 = wall.shape[0]

    kernel = functools.partial(convt_subpixel_kernel, W=W, fuse_in=fuse_in)

    in_specs = [
        pl.BlockSpec((1, Cin, S), lambda n: (n, 0, 0)),
        pl.BlockSpec((Cout4, 4 * Cin), lambda n: (0, 0)),
        pl.BlockSpec((Cout4, 1), lambda n: (0, 0)),
    ]
    args = [x, wall, bias4]
    if fuse_in:
        in_specs += [
            pl.BlockSpec((Cin, 1), lambda n: (0, 0)),
            pl.BlockSpec((Cin, 1), lambda n: (0, 0)),
        ]
        args += [in_scale, in_shift]

    yp, ssum, ssq = pl.pallas_call(
        kernel,
        out_shape=(
            jax.ShapeDtypeStruct((N, Cout4, S), jnp.float32),
            jax.ShapeDtypeStruct((N, Cout4, 1), jnp.float32),
            jax.ShapeDtypeStruct((N, Cout4, 1), jnp.float32),
        ),
        grid_spec=pltpu.PrefetchScalarGridSpec(
            num_scalar_prefetch=0,
            grid=(N,),
            in_specs=in_specs,
            out_specs=[
                pl.BlockSpec((1, Cout4, S), lambda n: (n, 0, 0)),
                pl.BlockSpec((1, Cout4, 1), lambda n: (n, 0, 0)),
                pl.BlockSpec((1, Cout4, 1), lambda n: (n, 0, 0)),
            ],
        ),
        compiler_params=pltpu.CompilerParams(
            dimension_semantics=("parallel",)),   # per-batch partials -> no RMW
    )(*args)
    return yp, ssum, ssq


# ----------------------------------------------------------------------------
# Wrapper-side helpers (weight fusion, parity interleave, BN stats).
# ----------------------------------------------------------------------------
def build_subpixel_weight(w_pt):
    """PyTorch ConvTranspose2d weight (Cin, Cout, 3, 3) -> fused (4*Cout, 4*Cin).

    Row blocks = output parities [ee, eo, oe, oo]; column blocks = shifted taps
    [x(r,c), x(r,c+1), x(r+1,c), x(r+1,c+1)] for k=3, s=2, p=1, out_pad=1.
    """
    cin, cout = w_pt.shape[0], w_pt.shape[1]

    def blk(kh, kw):                          # (Cout, Cin)
        return w_pt[:, :, kh, kw].T

    z = jnp.zeros((cout, cin), w_pt.dtype)
    rows = [
        jnp.concatenate([blk(1, 1), z,         z,         z        ], axis=1),
        jnp.concatenate([blk(1, 2), blk(1, 0), z,         z        ], axis=1),
        jnp.concatenate([blk(2, 1), z,         blk(0, 1), z        ], axis=1),
        jnp.concatenate([blk(2, 2), blk(2, 0), blk(0, 2), blk(0, 0)], axis=1),
    ]
    return jnp.concatenate(rows, axis=0)      # (4*Cout, 4*Cin)


def interleave_parity(yp, H, W):
    """(N, 4*C, H*W) parity-major -> (N, C, 2H, 2W) (XLA-fused layout restore)."""
    N, c4, _ = yp.shape
    C = c4 // 4
    v = yp.reshape(N, 2, 2, C, H, W)
    return v.transpose(0, 3, 4, 1, 5, 2).reshape(N, C, 2 * H, 2 * W)


def decoder_forward(x_nchw, params, eps=1e-5):
    """NCHW in / NCHW out, matching the PyTorch Decoder forward."""
    N, C, H, W = x_nchw.shape
    x = x_nchw.reshape(N, C, H * W)           # lane-dense (N, C, S), no transpose
    in_scale = in_shift = None
    out = None
    n_layers = len(params)

    for li, (w_pt, b, gamma, beta) in enumerate(params):
        cout = w_pt.shape[1]
        wall = build_subpixel_weight(w_pt)
        bias4 = jnp.tile(b, 4).reshape(4 * cout, 1)

        yp, ssum, ssq = conv_subpixel_layer(
            x, wall, bias4, in_scale, in_shift, H, W, fuse_in=(li > 0))

        # Training-mode BatchNorm statistics over (N, 2H, 2W), biased variance.
        cnt = float(N * 4 * H * W)
        ch_sum = ssum.sum(axis=(0, 2)).reshape(4, cout).sum(axis=0)
        ch_sq = ssq.sum(axis=(0, 2)).reshape(4, cout).sum(axis=0)
        mean = ch_sum / cnt
        var = jnp.maximum(ch_sq / cnt - mean * mean, 0.0)
        scale = gamma * jax.lax.rsqrt(var + eps)
        shift = beta - mean * scale

        y_full = interleave_parity(yp, H, W)   # raw conv output, (N,Cout,2H,2W)
        H, W = 2 * H, 2 * W

        if li + 1 < n_layers:
            # BN-apply + LeakyReLU are fused into the NEXT layer's conv kernel.
            x = y_full.reshape(N, cout, H * W)
            in_scale = scale.reshape(cout, 1)
            in_shift = shift.reshape(cout, 1)
        else:
            v = y_full * scale[None, :, None, None] + shift[None, :, None, None]
            out = jnp.where(v >= 0.0, v, 0.01 * v)
    return out


# ----------------------------------------------------------------------------
# Pure-JAX reference (lhs-dilated conv formulation of ConvTranspose2d).
# ----------------------------------------------------------------------------
def _reference_layer(x, w_pt, b, gamma, beta, eps=1e-5):
    w_conv = jnp.transpose(w_pt, (1, 0, 2, 3))[:, :, ::-1, ::-1]   # (Cout,Cin,3,3)
    y = jax.lax.conv_general_dilated(
        x, w_conv, window_strides=(1, 1), padding=[(1, 2), (1, 2)],
        lhs_dilation=(2, 2), rhs_dilation=(1, 1),
        dimension_numbers=("NCHW", "OIHW", "NCHW"))
    y = y + b[None, :, None, None]
    mean = y.mean(axis=(0, 2, 3), keepdims=True)
    var = y.var(axis=(0, 2, 3), keepdims=True)
    yn = gamma[None, :, None, None] * (y - mean) * jax.lax.rsqrt(var + eps)
    yn = yn + beta[None, :, None, None]
    return jnp.where(yn >= 0.0, yn, 0.01 * yn)


def decoder_reference(x, params):
    for (w_pt, b, gamma, beta) in params:
        x = _reference_layer(x, w_pt, b, gamma, beta)
    return x


if __name__ == "__main__":
    key = jax.random.PRNGKey(0)

    # channels[4] is the decoder input channel count (Decoder(channels)).
    channels = [3, 8, 16, 16, 32]
    N, H, W = 2, 4, 4

    # Deterministic synthetic parameters (PyTorch ConvTranspose2d weight layout
    # (Cin, Cout, 3, 3); BatchNorm default gamma=1, beta=0).
    params = []
    for i in range(4):
        cin, cout = channels[4 - i], channels[3 - i]
        key, kw_, kb_ = jax.random.split(key, 3)
        w = 0.1 * jax.random.normal(kw_, (cin, cout, 3, 3), jnp.float32)
        b = 0.1 * jax.random.normal(kb_, (cout,), jnp.float32)
        gamma = jnp.ones((cout,), jnp.float32)
        beta = jnp.zeros((cout,), jnp.float32)
        params.append((w, b, gamma, beta))

    key, kx = jax.random.split(key)
    x = jax.random.normal(kx, (N, channels[4], H, W), jnp.float32)   # NCHW

    decoder = jax.jit(decoder_forward)
    out = jax.block_until_ready(decoder(x, params))

    assert out.shape == (N, channels[0], 16 * H, 16 * W), out.shape
    assert jnp.all(jnp.isfinite(out))

    ref = decoder_reference(x, params)
    assert jnp.allclose(out, ref, atol=1e-3, rtol=1e-3), float(
        jnp.max(jnp.abs(out - ref)))

    print("KERNEL_OK")
</pallas_src>

<mosaic_0001>
module attributes {stable_mosaic.version = 11 : i64} {
  func.func @convt_subpixel_kernel(%arg0: i32, %arg1: memref<1x32x16xf32, #tpu.memory_space<vmem>>, %arg2: memref<64x128xf32, #tpu.memory_space<vmem>>, %arg3: memref<64x1xf32, #tpu.memory_space<vmem>>, %arg4: memref<1x64x16xf32, #tpu.memory_space<vmem>>, %arg5: memref<1x64x1xf32, #tpu.memory_space<vmem>>, %arg6: memref<1x64x1xf32, #tpu.memory_space<vmem>>) attributes {dimension_semantics = [#tpu.dimension_semantics<parallel>], iteration_bounds = array<i64: 2>, scalar_prefetch = 0 : i64, scratch_operands = 0 : i64, tpu.core_type = #tpu.core_type<tc>, window_params = [{transform_indices = @transform_0, window_bounds = array<i64: 1, 32, 16>}, {pipeline_mode = #tpu.pipeline_mode<synchronous>, transform_indices = @transform_1, window_bounds = array<i64: 64, 128>}, {pipeline_mode = #tpu.pipeline_mode<synchronous>, transform_indices = @transform_2, window_bounds = array<i64: 64, 1>}, {transform_indices = @transform_3, window_bounds = array<i64: 1, 64, 16>}, {transform_indices = @transform_4, window_bounds = array<i64: 1, 64, 1>}, {transform_indices = @transform_5, window_bounds = array<i64: 1, 64, 1>}]} {
    %c0 = arith.constant 0 : index
    %c0_0 = arith.constant 0 : index
    %c0_1 = arith.constant 0 : index
    %0 = vector.load %arg1[%c0, %c0_0, %c0_1] : memref<1x32x16xf32, #tpu.memory_space<vmem>>, vector<1x32x16xf32>
    %1 = vector.shape_cast %0 : vector<1x32x16xf32> to vector<32x16xf32>
    %2 = tpu.iota {dimensions = array<i32: 1>} : vector<1x16xi32>
    %c4_i32 = arith.constant 4 : i32
    %c0_i32 = arith.constant 0 : i32
    %3 = arith.cmpi eq, %c4_i32, %c0_i32 : i32
    %c1_i32 = arith.constant 1 : i32
    %4 = arith.select %3, %c1_i32, %c4_i32 : i32
    %5 = vector.broadcast %4 : i32 to vector<1x16xi32>
    %6 = arith.remsi %2, %5 : vector<1x16xi32>
    %c0_i32_2 = arith.constant 0 : i32
    %7 = vector.broadcast %c0_i32_2 : i32 to vector<1x16xi32>
    %8 = arith.cmpi ne, %6, %7 : vector<1x16xi32>
    %c0_i32_3 = arith.constant 0 : i32
    %9 = vector.broadcast %c0_i32_3 : i32 to vector<1x16xi32>
    %10 = arith.cmpi slt, %6, %9 : vector<1x16xi32>
    %c0_i32_4 = arith.constant 0 : i32
    %11 = arith.cmpi slt, %4, %c0_i32_4 : i32
    %12 = vector.broadcast %11 : i1 to vector<1x16xi1>
    %13 = vector.broadcast %12 : vector<1x16xi1> to vector<1x16xi1>
    %14 = arith.xori %10, %13 : vector<1x16xi1>
    %15 = arith.andi %14, %8 : vector<1x16xi1>
    %16 = vector.broadcast %4 : i32 to vector<1x16xi32>
    %17 = arith.addi %6, %16 : vector<1x16xi32>
    %18 = arith.select %15, %17, %6 : vector<1x16xi1>, vector<1x16xi32>
    %c3_i32 = arith.constant 3 : i32
    %19 = vector.broadcast %c3_i32 : i32 to vector<1x16xi32>
    %20 = arith.cmpi slt, %18, %19 : vector<1x16xi32>
    %21 = arith.extui %20 : vector<1x16xi1> to vector<1x16xi32>
    %22 = arith.sitofp %21 : vector<1x16xi32> to vector<1x16xf32>
    %cst = arith.constant 0.000000e+00 : f32
    %23 = vector.broadcast %cst : f32 to vector<32x1xf32>
    %24 = vector.extract_strided_slice %1 {offsets = [0, 1], sizes = [32, 15], strides = [1, 1]} : vector<32x16xf32> to vector<32x15xf32>
    %25 = tpu.concatenate %24, %23 in 1 : vector<32x15xf32>, vector<32x1xf32> -> vector<32x16xf32>
    %26 = vector.broadcast %22 : vector<1x16xf32> to vector<32x16xf32>
    %27 = arith.mulf %25, %26 : vector<32x16xf32>
    %cst_5 = arith.constant 0.000000e+00 : f32
    %28 = vector.broadcast %cst_5 : f32 to vector<32x4xf32>
    %29 = vector.extract_strided_slice %1 {offsets = [0, 4], sizes = [32, 12], strides = [1, 1]} : vector<32x16xf32> to vector<32x12xf32>
    %30 = tpu.concatenate %29, %28 in 1 : vector<32x12xf32>, vector<32x4xf32> -> vector<32x16xf32>
    %cst_6 = arith.constant 0.000000e+00 : f32
    %31 = vector.broadcast %cst_6 : f32 to vector<32x5xf32>
    %32 = vector.extract_strided_slice %1 {offsets = [0, 5], sizes = [32, 11], strides = [1, 1]} : vector<32x16xf32> to vector<32x11xf32>
    %33 = tpu.concatenate %32, %31 in 1 : vector<32x11xf32>, vector<32x5xf32> -> vector<32x16xf32>
    %34 = vector.broadcast %22 : vector<1x16xf32> to vector<32x16xf32>
    %35 = arith.mulf %33, %34 : vector<32x16xf32>
    %36 = tpu.concatenate %1, %27, %30, %35 in 0 : vector<32x16xf32>, vector<32x16xf32>, vector<32x16xf32>, vector<32x16xf32> -> vector<128x16xf32>
    %c0_7 = arith.constant 0 : index
    %c0_8 = arith.constant 0 : index
    %37 = vector.load %arg2[%c0_7, %c0_8] : memref<64x128xf32, #tpu.memory_space<vmem>>, vector<64x128xf32>
    %cst_9 = arith.constant dense<0.000000e+00> : vector<64x16xf32>
    %38 = tpu.matmul %37, %36, %cst_9 {dimension_numbers = #tpu.dot_dimension_numbers<[1], [0], [0], [1], [0, 0, 1, 1], [], []>} : vector<64x128xf32>, vector<128x16xf32>, vector<64x16xf32> -> vector<64x16xf32>
    %c0_10 = arith.constant 0 : index
    %c0_11 = arith.constant 0 : index
    %39 = vector.load %arg3[%c0_10, %c0_11] : memref<64x1xf32, #tpu.memory_space<vmem>>, vector<64x1xf32>
    %40 = vector.broadcast %39 : vector<64x1xf32> to vector<64x16xf32>
    %41 = arith.addf %38, %40 : vector<64x16xf32>
    %c0_12 = arith.constant 0 : index
    %c0_13 = arith.constant 0 : index
    %c0_14 = arith.constant 0 : index
    %42 = vector.load %arg4[%c0_12, %c0_13, %c0_14] : memref<1x64x16xf32, #tpu.memory_space<vmem>>, vector<1x64x16xf32>
    %43 = vector.shape_cast %42 : vector<1x64x16xf32> to vector<64x16xf32>
    %44 = vector.shape_cast %41 : vector<64x16xf32> to vector<1x64x16xf32>
    tpu.vector_store %arg4[%c0_12, %c0_13, %c0_14], %44 {strides = array<i32>} : memref<1x64x16xf32, #tpu.memory_space<vmem>>, vector<1x64x16xf32>,
    %cst_15 = arith.constant dense<0.000000e+00> : vector<64xf32>
    %45 = vector.multi_reduction <add>, %41, %cst_15 [1] : vector<64x16xf32> to vector<64xf32>
    %46 = vector.shape_cast %45 : vector<64xf32> to vector<64x1xf32>
    %c0_16 = arith.constant 0 : index
    %c0_17 = arith.constant 0 : index
    %c0_18 = arith.constant 0 : index
    %47 = vector.load %arg5[%c0_16, %c0_17, %c0_18] : memref<1x64x1xf32, #tpu.memory_space<vmem>>, vector<1x64x1xf32>
    %48 = vector.shape_cast %47 : vector<1x64x1xf32> to vector<64x1xf32>
    %49 = vector.shape_cast %46 : vector<64x1xf32> to vector<1x64x1xf32>
    tpu.vector_store %arg5[%c0_16, %c0_17, %c0_18], %49 {strides = array<i32>} : memref<1x64x1xf32, #tpu.memory_space<vmem>>, vector<1x64x1xf32>,
    %50 = arith.mulf %41, %41 : vector<64x16xf32>
    %cst_19 = arith.constant dense<0.000000e+00> : vector<64xf32>
    %51 = vector.multi_reduction <add>, %50, %cst_19 [1] : vector<64x16xf32> to vector<64xf32>
    %52 = vector.shape_cast %51 : vector<64xf32> to vector<64x1xf32>
    %c0_20 = arith.constant 0 : index
    %c0_21 = arith.constant 0 : index
    %c0_22 = arith.constant 0 : index
    %53 = vector.load %arg6[%c0_20, %c0_21, %c0_22] : memref<1x64x1xf32, #tpu.memory_space<vmem>>, vector<1x64x1xf32>
    %54 = vector.shape_cast %53 : vector<1x64x1xf32> to vector<64x1xf32>
    %55 = vector.shape_cast %52 : vector<64x1xf32> to vector<1x64x1xf32>
    tpu.vector_store %arg6[%c0_20, %c0_21, %c0_22], %55 {strides = array<i32>} : memref<1x64x1xf32, #tpu.memory_space<vmem>>, vector<1x64x1xf32>,
    return
  }
  func.func @transform_0(%arg0: i32) -> (i32, i32, i32) {
    %c0_i32 = arith.constant 0 : i32
    %c0_i32_0 = arith.constant 0 : i32
    %c0_i32_1 = arith.constant 0 : i32
    return %arg0, %c0_i32, %c0_i32_0 : i32, i32, i32
  }
  func.func @transform_1(%arg0: i32) -> (i32, i32) {
    %c0_i32 = arith.constant 0 : i32
    %c0_i32_0 = arith.constant 0 : i32
    %c0_i32_1 = arith.constant 0 : i32
    return %c0_i32, %c0_i32_0 : i32, i32
  }
  func.func @transform_2(%arg0: i32) -> (i32, i32) {
    %c0_i32 = arith.constant 0 : i32
    %c0_i32_0 = arith.constant 0 : i32
    %c0_i32_1 = arith.constant 0 : i32
    return %c0_i32, %c0_i32_0 : i32, i32
  }
  func.func @transform_3(%arg0: i32) -> (i32, i32, i32) {
    %c0_i32 = arith.constant 0 : i32
    %c0_i32_0 = arith.constant 0 : i32
    %c0_i32_1 = arith.constant 0 : i32
    return %arg0, %c0_i32, %c0_i32_0 : i32, i32, i32
  }
  func.func @transform_4(%arg0: i32) -> (i32, i32, i32) {
    %c0_i32 = arith.constant 0 : i32
    %c0_i32_0 = arith.constant 0 : i32
    %c0_i32_1 = arith.constant 0 : i32
    return %arg0, %c0_i32, %c0_i32_0 : i32, i32, i32
  }
  func.func @transform_5(%arg0: i32) -> (i32, i32, i32) {
    %c0_i32 = arith.constant 0 : i32
    %c0_i32_0 = arith.constant 0 : i32
    %c0_i32_1 = arith.constant 0 : i32
    return %arg0, %c0_i32, %c0_i32_0 : i32, i32, i32
  }
}

module attributes {stable_mosaic.version = 11 : i64} {
  func.func @convt_subpixel_kernel(%arg0: i32, %arg1: memref<1x16x64xf32, #tpu.memory_space<vmem>>, %arg2: memref<64x64xf32, #tpu.memory_space<vmem>>, %arg3: memref<64x1xf32, #tpu.memory_space<vmem>>, %arg4: memref<16x1xf32, #tpu.memory_space<vmem>>, %arg5: memref<16x1xf32, #tpu.memory_space<vmem>>, %arg6: memref<1x64x64xf32, #tpu.memory_space<vmem>>, %arg7: memref<1x64x1xf32, #tpu.memory_space<vmem>>, %arg8: memref<1x64x1xf32, #tpu.memory_space<vmem>>) attributes {dimension_semantics = [#tpu.dimension_semantics<parallel>], iteration_bounds = array<i64: 2>, scalar_prefetch = 0 : i64, scratch_operands = 0 : i64, tpu.core_type = #tpu.core_type<tc>, window_params = [{transform_indices = @transform_0, window_bounds = array<i64: 1, 16, 64>}, {pipeline_mode = #tpu.pipeline_mode<synchronous>, transform_indices = @transform_1, window_bounds = array<i64: 64, 64>}, {pipeline_mode = #tpu.pipeline_mode<synchronous>, transform_indices = @transform_2, window_bounds = array<i64: 64, 1>}, {pipeline_mode = #tpu.pipeline_mode<synchronous>, transform_indices = @transform_3, window_bounds = array<i64: 16, 1>}, {pipeline_mode = #tpu.pipeline_mode<synchronous>, transform_indices = @transform_4, window_bounds = array<i64: 16, 1>}, {transform_indices = @transform_5, window_bounds = array<i64: 1, 64, 64>}, {transform_indices = @transform_6, window_bounds = array<i64: 1, 64, 1>}, {transform_indices = @transform_7, window_bounds = array<i64: 1, 64, 1>}]} {
    %c0 = arith.constant 0 : index
    %c0_0 = arith.constant 0 : index
    %c0_1 = arith.constant 0 : index
    %0 = vector.load %arg1[%c0, %c0_0, %c0_1] : memref<1x16x64xf32, #tpu.memory_space<vmem>>, vector<1x16x64xf32>
    %1 = vector.shape_cast %0 : vector<1x16x64xf32> to vector<16x64xf32>
    %c0_2 = arith.constant 0 : index
    %c0_3 = arith.constant 0 : index
    %2 = vector.load %arg4[%c0_2, %c0_3] : memref<16x1xf32, #tpu.memory_space<vmem>>, vector<16x1xf32>
    %3 = vector.broadcast %2 : vector<16x1xf32> to vector<16x64xf32>
    %4 = arith.mulf %1, %3 : vector<16x64xf32>
    %c0_4 = arith.constant 0 : index
    %c0_5 = arith.constant 0 : index
    %5 = vector.load %arg5[%c0_4, %c0_5] : memref<16x1xf32, #tpu.memory_space<vmem>>, vector<16x1xf32>
    %6 = vector.broadcast %5 : vector<16x1xf32> to vector<16x64xf32>
    %7 = arith.addf %4, %6 : vector<16x64xf32>
    %cst = arith.constant 0.000000e+00 : f32
    %8 = vector.broadcast %cst : f32 to vector<16x64xf32>
    %9 = arith.cmpf oge, %7, %8 : vector<16x64xf32>
    %cst_6 = arith.constant 0.00999999977 : f32
    %10 = vector.broadcast %cst_6 : f32 to vector<16x64xf32>
    %11 = arith.mulf %10, %7 : vector<16x64xf32>
    %12 = arith.select %9, %7, %11 : vector<16x64xi1>, vector<16x64xf32>
    %13 = tpu.iota {dimensions = array<i32: 1>} : vector<1x64xi32>
    %c8_i32 = arith.constant 8 : i32
    %c0_i32 = arith.constant 0 : i32
    %14 = arith.cmpi eq, %c8_i32, %c0_i32 : i32
    %c1_i32 = arith.constant 1 : i32
    %15 = arith.select %14, %c1_i32, %c8_i32 : i32
    %16 = vector.broadcast %15 : i32 to vector<1x64xi32>
    %17 = arith.remsi %13, %16 : vector<1x64xi32>
    %c0_i32_7 = arith.constant 0 : i32
    %18 = vector.broadcast %c0_i32_7 : i32 to vector<1x64xi32>
    %19 = arith.cmpi ne, %17, %18 : vector<1x64xi32>
    %c0_i32_8 = arith.constant 0 : i32
    %20 = vector.broadcast %c0_i32_8 : i32 to vector<1x64xi32>
    %21 = arith.cmpi slt, %17, %20 : vector<1x64xi32>
    %c0_i32_9 = arith.constant 0 : i32
    %22 = arith.cmpi slt, %15, %c0_i32_9 : i32
    %23 = vector.broadcast %22 : i1 to vector<1x64xi1>
    %24 = vector.broadcast %23 : vector<1x64xi1> to vector<1x64xi1>
    %25 = arith.xori %21, %24 : vector<1x64xi1>
    %26 = arith.andi %25, %19 : vector<1x64xi1>
    %27 = vector.broadcast %15 : i32 to vector<1x64xi32>
    %28 = arith.addi %17, %27 : vector<1x64xi32>
    %29 = arith.select %26, %28, %17 : vector<1x64xi1>, vector<1x64xi32>
    %c7_i32 = arith.constant 7 : i32
    %30 = vector.broadcast %c7_i32 : i32 to vector<1x64xi32>
    %31 = arith.cmpi slt, %29, %30 : vector<1x64xi32>
    %32 = arith.extui %31 : vector<1x64xi1> to vector<1x64xi32>
    %33 = arith.sitofp %32 : vector<1x64xi32> to vector<1x64xf32>
    %cst_10 = arith.constant 0.000000e+00 : f32
    %34 = vector.broadcast %cst_10 : f32 to vector<16x1xf32>
    %35 = vector.extract_strided_slice %12 {offsets = [0, 1], sizes = [16, 63], strides = [1, 1]} : vector<16x64xf32> to vector<16x63xf32>
    %36 = tpu.concatenate %35, %34 in 1 : vector<16x63xf32>, vector<16x1xf32> -> vector<16x64xf32>
    %37 = vector.broadcast %33 : vector<1x64xf32> to vector<16x64xf32>
    %38 = arith.mulf %36, %37 : vector<16x64xf32>
    %cst_11 = arith.constant 0.000000e+00 : f32
    %39 = vector.broadcast %cst_11 : f32 to vector<16x8xf32>
    %40 = vector.extract_strided_slice %12 {offsets = [0, 8], sizes = [16, 56], strides = [1, 1]} : vector<16x64xf32> to vector<16x56xf32>
    %41 = tpu.concatenate %40, %39 in 1 : vector<16x56xf32>, vector<16x8xf32> -> vector<16x64xf32>
    %cst_12 = arith.constant 0.000000e+00 : f32
    %42 = vector.broadcast %cst_12 : f32 to vector<16x9xf32>
    %43 = vector.extract_strided_slice %12 {offsets = [0, 9], sizes = [16, 55], strides = [1, 1]} : vector<16x64xf32> to vector<16x55xf32>
    %44 = tpu.concatenate %43, %42 in 1 : vector<16x55xf32>, vector<16x9xf32> -> vector<16x64xf32>
    %45 = vector.broadcast %33 : vector<1x64xf32> to vector<16x64xf32>
    %46 = arith.mulf %44, %45 : vector<16x64xf32>
    %47 = tpu.concatenate %12, %38, %41, %46 in 0 : vector<16x64xf32>, vector<16x64xf32>, vector<16x64xf32>, vector<16x64xf32> -> vector<64x64xf32>
    %c0_13 = arith.constant 0 : index
    %c0_14 = arith.constant 0 : index
    %48 = vector.load %arg2[%c0_13, %c0_14] : memref<64x64xf32, #tpu.memory_space<vmem>>, vector<64x64xf32>
    %cst_15 = arith.constant dense<0.000000e+00> : vector<64x64xf32>
    %49 = tpu.matmul %48, %47, %cst_15 {dimension_numbers = #tpu.dot_dimension_numbers<[1], [0], [0], [1], [0, 0, 1, 1], [], []>} : vector<64x64xf32>, vector<64x64xf32>, vector<64x64xf32> -> vector<64x64xf32>
    %c0_16 = arith.constant 0 : index
    %c0_17 = arith.constant 0 : index
    %50 = vector.load %arg3[%c0_16, %c0_17] : memref<64x1xf32, #tpu.memory_space<vmem>>, vector<64x1xf32>
    %51 = vector.broadcast %50 : vector<64x1xf32> to vector<64x64xf32>
    %52 = arith.addf %49, %51 : vector<64x64xf32>
    %c0_18 = arith.constant 0 : index
    %c0_19 = arith.constant 0 : index
    %c0_20 = arith.constant 0 : index
    %53 = vector.load %arg6[%c0_18, %c0_19, %c0_20] : memref<1x64x64xf32, #tpu.memory_space<vmem>>, vector<1x64x64xf32>
    %54 = vector.shape_cast %53 : vector<1x64x64xf32> to vector<64x64xf32>
    %55 = vector.shape_cast %52 : vector<64x64xf32> to vector<1x64x64xf32>
    tpu.vector_store %arg6[%c0_18, %c0_19, %c0_20], %55 {strides = array<i32>} : memref<1x64x64xf32, #tpu.memory_space<vmem>>, vector<1x64x64xf32>,
    %cst_21 = arith.constant dense<0.000000e+00> : vector<64xf32>
    %56 = vector.multi_reduction <add>, %52, %cst_21 [1] : vector<64x64xf32> to vector<64xf32>
    %57 = vector.shape_cast %56 : vector<64xf32> to vector<64x1xf32>
    %c0_22 = arith.constant 0 : index
    %c0_23 = arith.constant 0 : index
    %c0_24 = arith.constant 0 : index
    %58 = vector.load %arg7[%c0_22, %c0_23, %c0_24] : memref<1x64x1xf32, #tpu.memory_space<vmem>>, vector<1x64x1xf32>
    %59 = vector.shape_cast %58 : vector<1x64x1xf32> to vector<64x1xf32>
    %60 = vector.shape_cast %57 : vector<64x1xf32> to vector<1x64x1xf32>
    tpu.vector_store %arg7[%c0_22, %c0_23, %c0_24], %60 {strides = array<i32>} : memref<1x64x1xf32, #tpu.memory_space<vmem>>, vector<1x64x1xf32>,
    %61 = arith.mulf %52, %52 : vector<64x64xf32>
    %cst_25 = arith.constant dense<0.000000e+00> : vector<64xf32>
    %62 = vector.multi_reduction <add>, %61, %cst_25 [1] : vector<64x64xf32> to vector<64xf32>
    %63 = vector.shape_cast %62 : vector<64xf32> to vector<64x1xf32>
    %c0_26 = arith.constant 0 : index
    %c0_27 = arith.constant 0 : index
    %c0_28 = arith.constant 0 : index
    %64 = vector.load %arg8[%c0_26, %c0_27, %c0_28] : memref<1x64x1xf32, #tpu.memory_space<vmem>>, vector<1x64x1xf32>
    %65 = vector.shape_cast %64 : vector<1x64x1xf32> to vector<64x1xf32>
    %66 = vector.shape_cast %63 : vector<64x1xf32> to vector<1x64x1xf32>
    tpu.vector_store %arg8[%c0_26, %c0_27, %c0_28], %66 {strides = array<i32>} : memref<1x64x1xf32, #tpu.memory_space<vmem>>, vector<1x64x1xf32>,
    return
  }
  func.func @transform_0(%arg0: i32) -> (i32, i32, i32) {
    %c0_i32 = arith.constant 0 : i32
    %c0_i32_0 = arith.constant 0 : i32
    %c0_i32_1 = arith.constant 0 : i32
    return %arg0, %c0_i32, %c0_i32_0 : i32, i32, i32
  }
  func.func @transform_1(%arg0: i32) -> (i32, i32) {
    %c0_i32 = arith.constant 0 : i32
    %c0_i32_0 = arith.constant 0 : i32
    %c0_i32_1 = arith.constant 0 : i32
    return %c0_i32, %c0_i32_0 : i32, i32
  }
  func.func @transform_2(%arg0: i32) -> (i32, i32) {
    %c0_i32 = arith.constant 0 : i32
    %c0_i32_0 = arith.constant 0 : i32
    %c0_i32_1 = arith.constant 0 : i32
    return %c0_i32, %c0_i32_0 : i32, i32
  }
  func.func @transform_3(%arg0: i32) -> (i32, i32) {
    %c0_i32 = arith.constant 0 : i32
    %c0_i32_0 = arith.constant 0 : i32
    %c0_i32_1 = arith.constant 0 : i32
    return %c0_i32, %c0_i32_0 : i32, i32
  }
  func.func @transform_4(%arg0: i32) -> (i32, i32) {
    %c0_i32 = arith.constant 0 : i32
    %c0_i32_0 = arith.constant 0 : i32
    %c0_i32_1 = arith.constant 0 : i32
    return %c0_i32, %c0_i32_0 : i32, i32
  }
  func.func @transform_5(%arg0: i32) -> (i32, i32, i32) {
    %c0_i32 = arith.constant 0 : i32
    %c0_i32_0 = arith.constant 0 : i32
    %c0_i32_1 = arith.constant 0 : i32
    return %arg0, %c0_i32, %c0_i32_0 : i32, i32, i32
  }
  func.func @transform_6(%arg0: i32) -> (i32, i32, i32) {
    %c0_i32 = arith.constant 0 : i32
    %c0_i32_0 = arith.constant 0 : i32
    %c0_i32_1 = arith.constant 0 : i32
    return %arg0, %c0_i32, %c0_i32_0 : i32, i32, i32
  }
  func.func @transform_7(%arg0: i32) -> (i32, i32, i32) {
    %c0_i32 = arith.constant 0 : i32
    %c0_i32_0 = arith.constant 0 : i32
    %c0_i32_1 = arith.constant 0 : i32
    return %arg0, %c0_i32, %c0_i32_0 : i32, i32, i32
  }
}

module attributes {stable_mosaic.version = 11 : i64} {
  func.func @convt_subpixel_kernel(%arg0: i32, %arg1: memref<1x16x256xf32, #tpu.memory_space<vmem>>, %arg2: memref<32x64xf32, #tpu.memory_space<vmem>>, %arg3: memref<32x1xf32, #tpu.memory_space<vmem>>, %arg4: memref<16x1xf32, #tpu.memory_space<vmem>>, %arg5: memref<16x1xf32, #tpu.memory_space<vmem>>, %arg6: memref<1x32x256xf32, #tpu.memory_space<vmem>>, %arg7: memref<1x32x1xf32, #tpu.memory_space<vmem>>, %arg8: memref<1x32x1xf32, #tpu.memory_space<vmem>>) attributes {dimension_semantics = [#tpu.dimension_semantics<parallel>], iteration_bounds = array<i64: 2>, scalar_prefetch = 0 : i64, scratch_operands = 0 : i64, tpu.core_type = #tpu.core_type<tc>, window_params = [{transform_indices = @transform_0, window_bounds = array<i64: 1, 16, 256>}, {pipeline_mode = #tpu.pipeline_mode<synchronous>, transform_indices = @transform_1, window_bounds = array<i64: 32, 64>}, {pipeline_mode = #tpu.pipeline_mode<synchronous>, transform_indices = @transform_2, window_bounds = array<i64: 32, 1>}, {pipeline_mode = #tpu.pipeline_mode<synchronous>, transform_indices = @transform_3, window_bounds = array<i64: 16, 1>}, {pipeline_mode = #tpu.pipeline_mode<synchronous>, transform_indices = @transform_4, window_bounds = array<i64: 16, 1>}, {transform_indices = @transform_5, window_bounds = array<i64: 1, 32, 256>}, {transform_indices = @transform_6, window_bounds = array<i64: 1, 32, 1>}, {transform_indices = @transform_7, window_bounds = array<i64: 1, 32, 1>}]} {
    %c0 = arith.constant 0 : index
    %c0_0 = arith.constant 0 : index
    %c0_1 = arith.constant 0 : index
    %0 = vector.load %arg1[%c0, %c0_0, %c0_1] : memref<1x16x256xf32, #tpu.memory_space<vmem>>, vector<1x16x256xf32>
    %1 = vector.shape_cast %0 : vector<1x16x256xf32> to vector<16x256xf32>
    %c0_2 = arith.constant 0 : index
    %c0_3 = arith.constant 0 : index
    %2 = vector.load %arg4[%c0_2, %c0_3] : memref<16x1xf32, #tpu.memory_space<vmem>>, vector<16x1xf32>
    %3 = vector.broadcast %2 : vector<16x1xf32> to vector<16x256xf32>
    %4 = arith.mulf %1, %3 : vector<16x256xf32>
    %c0_4 = arith.constant 0 : index
    %c0_5 = arith.constant 0 : index
    %5 = vector.load %arg5[%c0_4, %c0_5] : memref<16x1xf32, #tpu.memory_space<vmem>>, vector<16x1xf32>
    %6 = vector.broadcast %5 : vector<16x1xf32> to vector<16x256xf32>
    %7 = arith.addf %4, %6 : vector<16x256xf32>
    %cst = arith.constant 0.000000e+00 : f32
    %8 = vector.broadcast %cst : f32 to vector<16x256xf32>
    %9 = arith.cmpf oge, %7, %8 : vector<16x256xf32>
    %cst_6 = arith.constant 0.00999999977 : f32
    %10 = vector.broadcast %cst_6 : f32 to vector<16x256xf32>
    %11 = arith.mulf %10, %7 : vector<16x256xf32>
    %12 = arith.select %9, %7, %11 : vector<16x256xi1>, vector<16x256xf32>
    %13 = tpu.iota {dimensions = array<i32: 1>} : vector<1x256xi32>
    %c16_i32 = arith.constant 16 : i32
    %c0_i32 = arith.constant 0 : i32
    %14 = arith.cmpi eq, %c16_i32, %c0_i32 : i32
    %c1_i32 = arith.constant 1 : i32
    %15 = arith.select %14, %c1_i32, %c16_i32 : i32
    %16 = vector.broadcast %15 : i32 to vector<1x256xi32>
    %17 = arith.remsi %13, %16 : vector<1x256xi32>
    %c0_i32_7 = arith.constant 0 : i32
    %18 = vector.broadcast %c0_i32_7 : i32 to vector<1x256xi32>
    %19 = arith.cmpi ne, %17, %18 : vector<1x256xi32>
    %c0_i32_8 = arith.constant 0 : i32
    %20 = vector.broadcast %c0_i32_8 : i32 to vector<1x256xi32>
    %21 = arith.cmpi slt, %17, %20 : vector<1x256xi32>
    %c0_i32_9 = arith.constant 0 : i32
    %22 = arith.cmpi slt, %15, %c0_i32_9 : i32
    %23 = vector.broadcast %22 : i1 to vector<1x256xi1>
    %24 = vector.broadcast %23 : vector<1x256xi1> to vector<1x256xi1>
    %25 = arith.xori %21, %24 : vector<1x256xi1>
    %26 = arith.andi %25, %19 : vector<1x256xi1>
    %27 = vector.broadcast %15 : i32 to vector<1x256xi32>
    %28 = arith.addi %17, %27 : vector<1x256xi32>
    %29 = arith.select %26, %28, %17 : vector<1x256xi1>, vector<1x256xi32>
    %c15_i32 = arith.constant 15 : i32
    %30 = vector.broadcast %c15_i32 : i32 to vector<1x256xi32>
    %31 = arith.cmpi slt, %29, %30 : vector<1x256xi32>
    %32 = arith.extui %31 : vector<1x256xi1> to vector<1x256xi32>
    %33 = arith.sitofp %32 : vector<1x256xi32> to vector<1x256xf32>
    %cst_10 = arith.constant 0.000000e+00 : f32
    %34 = vector.broadcast %cst_10 : f32 to vector<16x1xf32>
    %35 = vector.extract_strided_slice %12 {offsets = [0, 1], sizes = [16, 255], strides = [1, 1]} : vector<16x256xf32> to vector<16x255xf32>
    %36 = tpu.concatenate %35, %34 in 1 : vector<16x255xf32>, vector<16x1xf32> -> vector<16x256xf32>
    %37 = vector.broadcast %33 : vector<1x256xf32> to vector<16x256xf32>
    %38 = arith.mulf %36, %37 : vector<16x256xf32>
    %cst_11 = arith.constant 0.000000e+00 : f32
    %39 = vector.broadcast %cst_11 : f32 to vector<16x16xf32>
    %40 = vector.extract_strided_slice %12 {offsets = [0, 16], sizes = [16, 240], strides = [1, 1]} : vector<16x256xf32> to vector<16x240xf32>
    %41 = tpu.concatenate %40, %39 in 1 : vector<16x240xf32>, vector<16x16xf32> -> vector<16x256xf32>
    %cst_12 = arith.constant 0.000000e+00 : f32
    %42 = vector.broadcast %cst_12 : f32 to vector<16x17xf32>
    %43 = vector.extract_strided_slice %12 {offsets = [0, 17], sizes = [16, 239], strides = [1, 1]} : vector<16x256xf32> to vector<16x239xf32>
    %44 = tpu.concatenate %43, %42 in 1 : vector<16x239xf32>, vector<16x17xf32> -> vector<16x256xf32>
    %45 = vector.broadcast %33 : vector<1x256xf32> to vector<16x256xf32>
    %46 = arith.mulf %44, %45 : vector<16x256xf32>
    %47 = tpu.concatenate %12, %38, %41, %46 in 0 : vector<16x256xf32>, vector<16x256xf32>, vector<16x256xf32>, vector<16x256xf32> -> vector<64x256xf32>
    %c0_13 = arith.constant 0 : index
    %c0_14 = arith.constant 0 : index
    %48 = vector.load %arg2[%c0_13, %c0_14] : memref<32x64xf32, #tpu.memory_space<vmem>>, vector<32x64xf32>
    %cst_15 = arith.constant dense<0.000000e+00> : vector<32x256xf32>
    %49 = tpu.matmul %48, %47, %cst_15 {dimension_numbers = #tpu.dot_dimension_numbers<[1], [0], [0], [1], [0, 0, 1, 1], [], []>} : vector<32x64xf32>, vector<64x256xf32>, vector<32x256xf32> -> vector<32x256xf32>
    %c0_16 = arith.constant 0 : index
    %c0_17 = arith.constant 0 : index
    %50 = vector.load %arg3[%c0_16, %c0_17] : memref<32x1xf32, #tpu.memory_space<vmem>>, vector<32x1xf32>
    %51 = vector.broadcast %50 : vector<32x1xf32> to vector<32x256xf32>
    %52 = arith.addf %49, %51 : vector<32x256xf32>
    %c0_18 = arith.constant 0 : index
    %c0_19 = arith.constant 0 : index
    %c0_20 = arith.constant 0 : index
    %53 = vector.load %arg6[%c0_18, %c0_19, %c0_20] : memref<1x32x256xf32, #tpu.memory_space<vmem>>, vector<1x32x256xf32>
    %54 = vector.shape_cast %53 : vector<1x32x256xf32> to vector<32x256xf32>
    %55 = vector.shape_cast %52 : vector<32x256xf32> to vector<1x32x256xf32>
    tpu.vector_store %arg6[%c0_18, %c0_19, %c0_20], %55 {strides = array<i32>} : memref<1x32x256xf32, #tpu.memory_space<vmem>>, vector<1x32x256xf32>,
    %cst_21 = arith.constant dense<0.000000e+00> : vector<32xf32>
    %56 = vector.multi_reduction <add>, %52, %cst_21 [1] : vector<32x256xf32> to vector<32xf32>
    %57 = vector.shape_cast %56 : vector<32xf32> to vector<32x1xf32>
    %c0_22 = arith.constant 0 : index
    %c0_23 = arith.constant 0 : index
    %c0_24 = arith.constant 0 : index
    %58 = vector.load %arg7[%c0_22, %c0_23, %c0_24] : memref<1x32x1xf32, #tpu.memory_space<vmem>>, vector<1x32x1xf32>
    %59 = vector.shape_cast %58 : vector<1x32x1xf32> to vector<32x1xf32>
    %60 = vector.shape_cast %57 : vector<32x1xf32> to vector<1x32x1xf32>
    tpu.vector_store %arg7[%c0_22, %c0_23, %c0_24], %60 {strides = array<i32>} : memref<1x32x1xf32, #tpu.memory_space<vmem>>, vector<1x32x1xf32>,
    %61 = arith.mulf %52, %52 : vector<32x256xf32>
    %cst_25 = arith.constant dense<0.000000e+00> : vector<32xf32>
    %62 = vector.multi_reduction <add>, %61, %cst_25 [1] : vector<32x256xf32> to vector<32xf32>
    %63 = vector.shape_cast %62 : vector<32xf32> to vector<32x1xf32>
    %c0_26 = arith.constant 0 : index
    %c0_27 = arith.constant 0 : index
    %c0_28 = arith.constant 0 : index
    %64 = vector.load %arg8[%c0_26, %c0_27, %c0_28] : memref<1x32x1xf32, #tpu.memory_space<vmem>>, vector<1x32x1xf32>
    %65 = vector.shape_cast %64 : vector<1x32x1xf32> to vector<32x1xf32>
    %66 = vector.shape_cast %63 : vector<32x1xf32> to vector<1x32x1xf32>
    tpu.vector_store %arg8[%c0_26, %c0_27, %c0_28], %66 {strides = array<i32>} : memref<1x32x1xf32, #tpu.memory_space<vmem>>, vector<1x32x1xf32>,
    return
  }
  func.func @transform_0(%arg0: i32) -> (i32, i32, i32) {
    %c0_i32 = arith.constant 0 : i32
    %c0_i32_0 = arith.constant 0 : i32
    %c0_i32_1 = arith.constant 0 : i32
    return %arg0, %c0_i32, %c0_i32_0 : i32, i32, i32
  }
  func.func @transform_1(%arg0: i32) -> (i32, i32) {
    %c0_i32 = arith.constant 0 : i32
    %c0_i32_0 = arith.constant 0 : i32
    %c0_i32_1 = arith.constant 0 : i32
    return %c0_i32, %c0_i32_0 : i32, i32
  }
  func.func @transform_2(%arg0: i32) -> (i32, i32) {
    %c0_i32 = arith.constant 0 : i32
    %c0_i32_0 = arith.constant 0 : i32
    %c0_i32_1 = arith.constant 0 : i32
    return %c0_i32, %c0_i32_0 : i32, i32
  }
  func.func @transform_3(%arg0: i32) -> (i32, i32) {
    %c0_i32 = arith.constant 0 : i32
    %c0_i32_0 = arith.constant 0 : i32
    %c0_i32_1 = arith.constant 0 : i32
    return %c0_i32, %c0_i32_0 : i32, i32
  }
  func.func @transform_4(%arg0: i32) -> (i32, i32) {
    %c0_i32 = arith.constant 0 : i32
    %c0_i32_0 = arith.constant 0 : i32
    %c0_i32_1 = arith.constant 0 : i32
    return %c0_i32, %c0_i32_0 : i32, i32
  }
  func.func @transform_5(%arg0: i32) -> (i32, i32, i32) {
    %c0_i32 = arith.constant 0 : i32
    %c0_i32_0 = arith.constant 0 : i32
    %c0_i32_1 = arith.constant 0 : i32
    return %arg0, %c0_i32, %c0_i32_0 : i32, i32, i32
  }
  func.func @transform_6(%arg0: i32) -> (i32, i32, i32) {
    %c0_i32 = arith.constant 0 : i32
    %c0_i32_0 = arith.constant 0 : i32
    %c0_i32_1 = arith.constant 0 : i32
    return %arg0, %c0_i32, %c0_i32_0 : i32, i32, i32
  }
  func.func @transform_7(%arg0: i32) -> (i32, i32, i32) {
    %c0_i32 = arith.constant 0 : i32
    %c0_i32_0 = arith.constant 0 : i32
    %c0_i32_1 = arith.constant 0 : i32
    return %arg0, %c0_i32, %c0_i32_0 : i32, i32, i32
  }
}

module attributes {stable_mosaic.version = 11 : i64} {
  func.func @convt_subpixel_kernel(%arg0: i32, %arg1: memref<1x8x1024xf32, #tpu.memory_space<vmem>>, %arg2: memref<12x32xf32, #tpu.memory_space<vmem>>, %arg3: memref<12x1xf32, #tpu.memory_space<vmem>>, %arg4: memref<8x1xf32, #tpu.memory_space<vmem>>, %arg5: memref<8x1xf32, #tpu.memory_space<vmem>>, %arg6: memref<1x12x1024xf32, #tpu.memory_space<vmem>>, %arg7: memref<1x12x1xf32, #tpu.memory_space<vmem>>, %arg8: memref<1x12x1xf32, #tpu.memory_space<vmem>>) attributes {dimension_semantics = [#tpu.dimension_semantics<parallel>], iteration_bounds = array<i64: 2>, scalar_prefetch = 0 : i64, scratch_operands = 0 : i64, tpu.core_type = #tpu.core_type<tc>, window_params = [{transform_indices = @transform_0, window_bounds = array<i64: 1, 8, 1024>}, {pipeline_mode = #tpu.pipeline_mode<synchronous>, transform_indices = @transform_1, window_bounds = array<i64: 12, 32>}, {pipeline_mode = #tpu.pipeline_mode<synchronous>, transform_indices = @transform_2, window_bounds = array<i64: 12, 1>}, {pipeline_mode = #tpu.pipeline_mode<synchronous>, transform_indices = @transform_3, window_bounds = array<i64: 8, 1>}, {pipeline_mode = #tpu.pipeline_mode<synchronous>, transform_indices = @transform_4, window_bounds = array<i64: 8, 1>}, {transform_indices = @transform_5, window_bounds = array<i64: 1, 12, 1024>}, {transform_indices = @transform_6, window_bounds = array<i64: 1, 12, 1>}, {transform_indices = @transform_7, window_bounds = array<i64: 1, 12, 1>}]} {
    %c0 = arith.constant 0 : index
    %c0_0 = arith.constant 0 : index
    %c0_1 = arith.constant 0 : index
    %0 = vector.load %arg1[%c0, %c0_0, %c0_1] : memref<1x8x1024xf32, #tpu.memory_space<vmem>>, vector<1x8x1024xf32>
    %1 = vector.shape_cast %0 : vector<1x8x1024xf32> to vector<8x1024xf32>
    %c0_2 = arith.constant 0 : index
    %c0_3 = arith.constant 0 : index
    %2 = vector.load %arg4[%c0_2, %c0_3] : memref<8x1xf32, #tpu.memory_space<vmem>>, vector<8x1xf32>
    %3 = vector.broadcast %2 : vector<8x1xf32> to vector<8x1024xf32>
    %4 = arith.mulf %1, %3 : vector<8x1024xf32>
    %c0_4 = arith.constant 0 : index
    %c0_5 = arith.constant 0 : index
    %5 = vector.load %arg5[%c0_4, %c0_5] : memref<8x1xf32, #tpu.memory_space<vmem>>, vector<8x1xf32>
    %6 = vector.broadcast %5 : vector<8x1xf32> to vector<8x1024xf32>
    %7 = arith.addf %4, %6 : vector<8x1024xf32>
    %cst = arith.constant 0.000000e+00 : f32
    %8 = vector.broadcast %cst : f32 to vector<8x1024xf32>
    %9 = arith.cmpf oge, %7, %8 : vector<8x1024xf32>
    %cst_6 = arith.constant 0.00999999977 : f32
    %10 = vector.broadcast %cst_6 : f32 to vector<8x1024xf32>
    %11 = arith.mulf %10, %7 : vector<8x1024xf32>
    %12 = arith.select %9, %7, %11 : vector<8x1024xi1>, vector<8x1024xf32>
    %13 = tpu.iota {dimensions = array<i32: 1>} : vector<1x1024xi32>
    %c32_i32 = arith.constant 32 : i32
    %c0_i32 = arith.constant 0 : i32
    %14 = arith.cmpi eq, %c32_i32, %c0_i32 : i32
    %c1_i32 = arith.constant 1 : i32
    %15 = arith.select %14, %c1_i32, %c32_i32 : i32
    %16 = vector.broadcast %15 : i32 to vector<1x1024xi32>
    %17 = arith.remsi %13, %16 : vector<1x1024xi32>
    %c0_i32_7 = arith.constant 0 : i32
    %18 = vector.broadcast %c0_i32_7 : i32 to vector<1x1024xi32>
    %19 = arith.cmpi ne, %17, %18 : vector<1x1024xi32>
    %c0_i32_8 = arith.constant 0 : i32
    %20 = vector.broadcast %c0_i32_8 : i32 to vector<1x1024xi32>
    %21 = arith.cmpi slt, %17, %20 : vector<1x1024xi32>
    %c0_i32_9 = arith.constant 0 : i32
    %22 = arith.cmpi slt, %15, %c0_i32_9 : i32
    %23 = vector.broadcast %22 : i1 to vector<1x1024xi1>
    %24 = vector.broadcast %23 : vector<1x1024xi1> to vector<1x1024xi1>
    %25 = arith.xori %21, %24 : vector<1x1024xi1>
    %26 = arith.andi %25, %19 : vector<1x1024xi1>
    %27 = vector.broadcast %15 : i32 to vector<1x1024xi32>
    %28 = arith.addi %17, %27 : vector<1x1024xi32>
    %29 = arith.select %26, %28, %17 : vector<1x1024xi1>, vector<1x1024xi32>
    %c31_i32 = arith.constant 31 : i32
    %30 = vector.broadcast %c31_i32 : i32 to vector<1x1024xi32>
    %31 = arith.cmpi slt, %29, %30 : vector<1x1024xi32>
    %32 = arith.extui %31 : vector<1x1024xi1> to vector<1x1024xi32>
    %33 = arith.sitofp %32 : vector<1x1024xi32> to vector<1x1024xf32>
    %cst_10 = arith.constant 0.000000e+00 : f32
    %34 = vector.broadcast %cst_10 : f32 to vector<8x1xf32>
    %35 = vector.extract_strided_slice %12 {offsets = [0, 1], sizes = [8, 1023], strides = [1, 1]} : vector<8x1024xf32> to vector<8x1023xf32>
    %36 = tpu.concatenate %35, %34 in 1 : vector<8x1023xf32>, vector<8x1xf32> -> vector<8x1024xf32>
    %37 = vector.broadcast %33 : vector<1x1024xf32> to vector<8x1024xf32>
    %38 = arith.mulf %36, %37 : vector<8x1024xf32>
    %cst_11 = arith.constant 0.000000e+00 : f32
    %39 = vector.broadcast %cst_11 : f32 to vector<8x32xf32>
    %40 = vector.extract_strided_slice %12 {offsets = [0, 32], sizes = [8, 992], strides = [1, 1]} : vector<8x1024xf32> to vector<8x992xf32>
    %41 = tpu.concatenate %40, %39 in 1 : vector<8x992xf32>, vector<8x32xf32> -> vector<8x1024xf32>
    %cst_12 = arith.constant 0.000000e+00 : f32
    %42 = vector.broadcast %cst_12 : f32 to vector<8x33xf32>
    %43 = vector.extract_strided_slice %12 {offsets = [0, 33], sizes = [8, 991], strides = [1, 1]} : vector<8x1024xf32> to vector<8x991xf32>
    %44 = tpu.concatenate %43, %42 in 1 : vector<8x991xf32>, vector<8x33xf32> -> vector<8x1024xf32>
    %45 = vector.broadcast %33 : vector<1x1024xf32> to vector<8x1024xf32>
    %46 = arith.mulf %44, %45 : vector<8x1024xf32>
    %47 = tpu.concatenate %12, %38, %41, %46 in 0 : vector<8x1024xf32>, vector<8x1024xf32>, vector<8x1024xf32>, vector<8x1024xf32> -> vector<32x1024xf32>
    %c0_13 = arith.constant 0 : index
    %c0_14 = arith.constant 0 : index
    %48 = vector.load %arg2[%c0_13, %c0_14] : memref<12x32xf32, #tpu.memory_space<vmem>>, vector<12x32xf32>
    %cst_15 = arith.constant dense<0.000000e+00> : vector<12x1024xf32>
    %49 = tpu.matmul %48, %47, %cst_15 {dimension_numbers = #tpu.dot_dimension_numbers<[1], [0], [0], [1], [0, 0, 1, 1], [], []>} : vector<12x32xf32>, vector<32x1024xf32>, vector<12x1024xf32> -> vector<12x1024xf32>
    %c0_16 = arith.constant 0 : index
    %c0_17 = arith.constant 0 : index
    %50 = vector.load %arg3[%c0_16, %c0_17] : memref<12x1xf32, #tpu.memory_space<vmem>>, vector<12x1xf32>
    %51 = vector.broadcast %50 : vector<12x1xf32> to vector<12x1024xf32>
    %52 = arith.addf %49, %51 : vector<12x1024xf32>
    %c0_18 = arith.constant 0 : index
    %c0_19 = arith.constant 0 : index
    %c0_20 = arith.constant 0 : index
    %53 = vector.load %arg6[%c0_18, %c0_19, %c0_20] : memref<1x12x1024xf32, #tpu.memory_space<vmem>>, vector<1x12x1024xf32>
    %54 = vector.shape_cast %53 : vector<1x12x1024xf32> to vector<12x1024xf32>
    %55 = vector.shape_cast %52 : vector<12x1024xf32> to vector<1x12x1024xf32>
    tpu.vector_store %arg6[%c0_18, %c0_19, %c0_20], %55 {strides = array<i32>} : memref<1x12x1024xf32, #tpu.memory_space<vmem>>, vector<1x12x1024xf32>,
    %cst_21 = arith.constant dense<0.000000e+00> : vector<12xf32>
    %56 = vector.multi_reduction <add>, %52, %cst_21 [1] : vector<12x1024xf32> to vector<12xf32>
    %57 = vector.shape_cast %56 : vector<12xf32> to vector<12x1xf32>
    %c0_22 = arith.constant 0 : index
    %c0_23 = arith.constant 0 : index
    %c0_24 = arith.constant 0 : index
    %58 = vector.load %arg7[%c0_22, %c0_23, %c0_24] : memref<1x12x1xf32, #tpu.memory_space<vmem>>, vector<1x12x1xf32>
    %59 = vector.shape_cast %58 : vector<1x12x1xf32> to vector<12x1xf32>
    %60 = vector.shape_cast %57 : vector<12x1xf32> to vector<1x12x1xf32>
    tpu.vector_store %arg7[%c0_22, %c0_23, %c0_24], %60 {strides = array<i32>} : memref<1x12x1xf32, #tpu.memory_space<vmem>>, vector<1x12x1xf32>,
    %61 = arith.mulf %52, %52 : vector<12x1024xf32>
    %cst_25 = arith.constant dense<0.000000e+00> : vector<12xf32>
    %62 = vector.multi_reduction <add>, %61, %cst_25 [1] : vector<12x1024xf32> to vector<12xf32>
    %63 = vector.shape_cast %62 : vector<12xf32> to vector<12x1xf32>
    %c0_26 = arith.constant 0 : index
    %c0_27 = arith.constant 0 : index
    %c0_28 = arith.constant 0 : index
    %64 = vector.load %arg8[%c0_26, %c0_27, %c0_28] : memref<1x12x1xf32, #tpu.memory_space<vmem>>, vector<1x12x1xf32>
    %65 = vector.shape_cast %64 : vector<1x12x1xf32> to vector<12x1xf32>
    %66 = vector.shape_cast %63 : vector<12x1xf32> to vector<1x12x1xf32>
    tpu.vector_store %arg8[%c0_26, %c0_27, %c0_28], %66 {strides = array<i32>} : memref<1x12x1xf32, #tpu.memory_space<vmem>>, vector<1x12x1xf32>,
    return
  }
  func.func @transform_0(%arg0: i32) -> (i32, i32, i32) {
    %c0_i32 = arith.constant 0 : i32
    %c0_i32_0 = arith.constant 0 : i32
    %c0_i32_1 = arith.constant 0 : i32
    return %arg0, %c0_i32, %c0_i32_0 : i32, i32, i32
  }
  func.func @transform_1(%arg0: i32) -> (i32, i32) {
    %c0_i32 = arith.constant 0 : i32
    %c0_i32_0 = arith.constant 0 : i32
    %c0_i32_1 = arith.constant 0 : i32
    return %c0_i32, %c0_i32_0 : i32, i32
  }
  func.func @transform_2(%arg0: i32) -> (i32, i32) {
    %c0_i32 = arith.constant 0 : i32
    %c0_i32_0 = arith.constant 0 : i32
    %c0_i32_1 = arith.constant 0 : i32
    return %c0_i32, %c0_i32_0 : i32, i32
  }
  func.func @transform_3(%arg0: i32) -> (i32, i32) {
    %c0_i32 = arith.constant 0 : i32
    %c0_i32_0 = arith.constant 0 : i32
    %c0_i32_1 = arith.constant 0 : i32
    return %c0_i32, %c0_i32_0 : i32, i32
  }
  func.func @transform_4(%arg0: i32) -> (i32, i32) {
    %c0_i32 = arith.constant 0 : i32
    %c0_i32_0 = arith.constant 0 : i32
    %c0_i32_1 = arith.constant 0 : i32
    return %c0_i32, %c0_i32_0 : i32, i32
  }
  func.func @transform_5(%arg0: i32) -> (i32, i32, i32) {
    %c0_i32 = arith.constant 0 : i32
    %c0_i32_0 = arith.constant 0 : i32
    %c0_i32_1 = arith.constant 0 : i32
    return %arg0, %c0_i32, %c0_i32_0 : i32, i32, i32
  }
  func.func @transform_6(%arg0: i32) -> (i32, i32, i32) {
    %c0_i32 = arith.constant 0 : i32
    %c0_i32_0 = arith.constant 0 : i32
    %c0_i32_1 = arith.constant 0 : i32
    return %arg0, %c0_i32, %c0_i32_0 : i32, i32, i32
  }
  func.func @transform_7(%arg0: i32) -> (i32, i32, i32) {
    %c0_i32 = arith.constant 0 : i32
    %c0_i32_0 = arith.constant 0 : i32
    %c0_i32_1 = arith.constant 0 : i32
    return %arg0, %c0_i32, %c0_i32_0 : i32, i32, i32
  }
}

</mosaic_0001>

<bundles_post_ra>
// kernel: tile.3
= control target key start
LH: loop header
LB: loop body
LE: loop exit
PB: predicated region body
PF: predicated region fallthrough
CT: control target
= control target key end

     0   :  { %vm7_vm0 = vcmask 7168   ;;  %s26_s10 = smov 126   ;;  %s49_s0 = inlined_call_operand.vmem [shape: f32[4,3], index: 0, kind: input, shape index: {}]   ;;  %s50_s1 = inlined_call_operand.vmem [shape: f32[12,1], index: 1, kind: output, shape index: {}]  }
   0x1   :  { %v4_v0 = vld [vmem:[%s49_s0] sm:$0xf]  ;;  %s25_s0 = smov 127  }
   0x2   :  { %5 = vst [vmem:[#allocation0] sm:$0xf] %v4_v0 }
   0x9   :  { %v9_v1 = vld [vmem:[#allocation0] sm:$0xf]  }
   0xa   :  { %v6_v2 = vld [vmem:[#allocation0] sm:$0xf]   ;;  %10 = vrot.lane.b32.xlu0 %v9_v1, %s25_s0 }
   0xb   :  { %8 = vst.msk [vmem:[%s50_s1] ss:$3 sm:$0xf] %vm7_vm0, %v6_v2   ;;  %v15_v3 = vld [vmem:[#allocation0] sm:$0xf]  }
   0xe   :  { %16 = vrot.lane.b32.xlu0 %v15_v3, %s26_s10 }
  0x7c   :  { %v11_v4 = vpop.permute.xlu0 %10  }
  0x7d   :  { %21 = vst.msk [vmem:[%s50_s1 + $0x1] ss:$3 sm:$0xf] %vm7_vm0, %v11_v4  }
  0x80   :  { %v17_v5 = vpop.permute.xlu0 %16  }
  0x81   :  { %22 = vst.msk [vmem:[%s50_s1 + $0x2] ss:$3 sm:$0xf] %vm7_vm0, %v17_v5  }

// kernel: tile.38
= control target key start
LH: loop header
LB: loop body
LE: loop exit
PB: predicated region body
PF: predicated region fallthrough
CT: control target
= control target key end

     0   :  { %2 = vsyncpa [#allocation1], 0  ;;  %s44_s6 = smov [#allocation0]   ;;  %s70_s0 = inlined_call_operand.hbm [shape: f32[3], index: 0, kind: input, shape index: {}]   ;;  %s71_s1 = inlined_call_operand.vmem [shape: f32[4,3], index: 1, kind: output, shape index: {}]  }
   0x1   :  { %s9_s7 = sshll.u32 %s44_s6, 4  ;;  %s20_s10 = scalar_lea.hbm %s70_s0, 16  ;;  %s10_s7 = int_to_ptr.vmem [resolvable:$true] %s9_s7 }
   0x2   :  { %p21_p0 = scmp.ne.s32.totalorder %s70_s0, %s20_s10  ;;  %p24_p1 = scmp.lt.u32.totalorder %s20_s10, %s70_s0 }
   0x4   :  { %p26_p2 = pnand %p24_p1, %p21_p0 }
   0x6   :  { %29 = shalt.err (!%p26_p2)
}
   0x7   :  { %s30_s15 = scalar_lea.vmem %s10_s7, 16  ;;  %s34_s16 = scalar_lea.vmem %s10_s7, 32 }
   0x8   :  { %p31_p3 = scmp.ne.s32.totalorder %s10_s7, %s30_s15  ;;  %p35_p4 = scmp.lt.s32.totalorder %s10_s7, %s10_s7 }
   0x9   :  { %p36_p5 = scmp.lt.s32.totalorder %s34_s16, %s30_s15 }
   0xb   :  { %p37_p6 = por %p36_p5, %p35_p4 }
   0xd   :  { %p38_p7 = pnand %p37_p6, %p31_p3 }
   0xf   :  { %41 = shalt.err (!%p38_p7)
}
  0x10   :  { %12 = dma.hbm_to_vmem [thread:$0]  %s70_s0, 16, %s10_s7, [#allocation1]  }
  0x11   :  { %42 = dma.done.wait [#allocation1], 16  }
  0x12   :  { %43 = vsyncadd [#allocation1], 4294967280  ;;  %v16_v0 = vld [vmem:[#allocation0] ss:$0 sm:$0xff] }
  0x13   :  { %17 = vst [vmem:[%s71_s1] sm:$0xf] %v16_v0 }
  0x14   :  { %18 = vsyncpa [#allocation1], 1 }

// kernel: tile.23
= control target key start
LH: loop header
LB: loop body
LE: loop exit
PB: predicated region body
PF: predicated region fallthrough
CT: control target
= control target key end

     0   :  { %2 = vsyncpa [#allocation1], 0  ;;  %s44_s6 = smov [#allocation0]   ;;  %s70_s0 = inlined_call_operand.hbm [shape: f32[16], index: 0, kind: input, shape index: {}]   ;;  %s71_s1 = inlined_call_operand.vmem [shape: f32[4,16], index: 1, kind: output, shape index: {}]  }
   0x1   :  { %s9_s7 = sshll.u32 %s44_s6, 4  ;;  %s20_s10 = scalar_lea.hbm %s70_s0, 16  ;;  %s10_s7 = int_to_ptr.vmem [resolvable:$true] %s9_s7 }
   0x2   :  { %p21_p0 = scmp.ne.s32.totalorder %s70_s0, %s20_s10  ;;  %p24_p1 = scmp.lt.u32.totalorder %s20_s10, %s70_s0 }
   0x4   :  { %p26_p2 = pnand %p24_p1, %p21_p0 }
   0x6   :  { %29 = shalt.err (!%p26_p2)
}
   0x7   :  { %s30_s15 = scalar_lea.vmem %s10_s7, 16  ;;  %s34_s16 = scalar_lea.vmem %s10_s7, 32 }
   0x8   :  { %p31_p3 = scmp.ne.s32.totalorder %s10_s7, %s30_s15  ;;  %p35_p4 = scmp.lt.s32.totalorder %s10_s7, %s10_s7 }
   0x9   :  { %p36_p5 = scmp.lt.s32.totalorder %s34_s16, %s30_s15 }
   0xb   :  { %p37_p6 = por %p36_p5, %p35_p4 }
   0xd   :  { %p38_p7 = pnand %p37_p6, %p31_p3 }
   0xf   :  { %41 = shalt.err (!%p38_p7)
}
  0x10   :  { %12 = dma.hbm_to_vmem [thread:$0]  %s70_s0, 16, %s10_s7, [#allocation1]  }
  0x11   :  { %42 = dma.done.wait [#allocation1], 16  }
  0x12   :  { %43 = vsyncadd [#allocation1], 4294967280  ;;  %v16_v0 = vld [vmem:[#allocation0] ss:$0 sm:$0xff] }
  0x13   :  { %17 = vst [vmem:[%s71_s1] sm:$0xf] %v16_v0 }
  0x14   :  { %18 = vsyncpa [#allocation1], 1 }

// kernel: tile.33
= control target key start
LH: loop header
LB: loop body
LE: loop exit
PB: predicated region body
PF: predicated region fallthrough
CT: control target
= control target key end

     0   :  { %2 = vsyncpa [#allocation1], 0  ;;  %s44_s6 = smov [#allocation0]   ;;  %s70_s0 = inlined_call_operand.hbm [shape: f32[8], index: 0, kind: input, shape index: {}]   ;;  %s71_s1 = inlined_call_operand.vmem [shape: f32[4,8], index: 1, kind: output, shape index: {}]  }
   0x1   :  { %s9_s7 = sshll.u32 %s44_s6, 4  ;;  %s20_s10 = scalar_lea.hbm %s70_s0, 16  ;;  %s10_s7 = int_to_ptr.vmem [resolvable:$true] %s9_s7 }
   0x2   :  { %p21_p0 = scmp.ne.s32.totalorder %s70_s0, %s20_s10  ;;  %p24_p1 = scmp.lt.u32.totalorder %s20_s10, %s70_s0 }
   0x4   :  { %p26_p2 = pnand %p24_p1, %p21_p0 }
   0x6   :  { %29 = shalt.err (!%p26_p2)
}
   0x7   :  { %s30_s15 = scalar_lea.vmem %s10_s7, 16  ;;  %s34_s16 = scalar_lea.vmem %s10_s7, 32 }
   0x8   :  { %p31_p3 = scmp.ne.s32.totalorder %s10_s7, %s30_s15  ;;  %p35_p4 = scmp.lt.s32.totalorder %s10_s7, %s10_s7 }
   0x9   :  { %p36_p5 = scmp.lt.s32.totalorder %s34_s16, %s30_s15 }
   0xb   :  { %p37_p6 = por %p36_p5, %p35_p4 }
   0xd   :  { %p38_p7 = pnand %p37_p6, %p31_p3 }
   0xf   :  { %41 = shalt.err (!%p38_p7)
}
  0x10   :  { %12 = dma.hbm_to_vmem [thread:$0]  %s70_s0, 16, %s10_s7, [#allocation1]  }
  0x11   :  { %42 = dma.done.wait [#allocation1], 16  }
  0x12   :  { %43 = vsyncadd [#allocation1], 4294967280  ;;  %v16_v0 = vld [vmem:[#allocation0] ss:$0 sm:$0xff] }
  0x13   :  { %17 = vst [vmem:[%s71_s1] sm:$0xf] %v16_v0 }
  0x14   :  { %18 = vsyncpa [#allocation1], 1 }

// kernel: tile.2
= control target key start
LH: loop header
LB: loop body
LE: loop exit
PB: predicated region body
PF: predicated region fallthrough
CT: control target
= control target key end

     0   :  { %s66_s8 = smov 125   ;;  %vm7_vm0 = vcmask 7168   ;;  %s67_s11 = smov 126   ;;  %s117_s0 = inlined_call_operand.vmem [shape: f32[4,8], index: 0, kind: input, shape index: {}]   ;;  %s118_s1 = inlined_call_operand.vmem [shape: f32[32,1], index: 1, kind: output, shape index: {}]  }
   0x1   :  { %v4_v0 = vld [vmem:[%s117_s0] sm:$0xf]  ;;  %s65_s0 = smov 127   ;;  %s68_s12 = smov 124  }
   0x2   :  { %5 = vst [vmem:[#allocation0] sm:$0xf] %v4_v0  ;;  %s69_s13 = smov 123   ;;  %s70_s14 = smov 122  }
   0x3   :  { %s71_s15 = smov 121  }
   0x9   :  { %v9_v1 = vld [vmem:[#allocation0] sm:$0xf]  }
   0xa   :  { %v21_v2 = vld [vmem:[#allocation0] sm:$0xf]   ;;  %10 = vrot.lane.b32.xlu0 %v9_v1, %s65_s0 }
   0xb   :  { %22 = vrot.lane.b32.xlu1 %v21_v2, %s66_s8  ;;  %v15_v3 = vld [vmem:[#allocation0] sm:$0xf]  }
   0xc   :  { %v27_v4 = vld [vmem:[#allocation0] sm:$0xf]  }
   0xd   :  { %v6_v5 = vld [vmem:[#allocation0] sm:$0xf]  }
   0xe   :  { %8 = vst.msk [vmem:[%s118_s1] ss:$8 sm:$0xf] %vm7_vm0, %v6_v5   ;;  %16 = vrot.lane.b32.xlu0 %v15_v3, %s67_s11  ;;  %v33_v6 = vld [vmem:[#allocation0] sm:$0xf]  }
   0xf   :  { %28 = vrot.lane.b32.xlu1 %v27_v4, %s68_s12  ;;  %v39_v7 = vld [vmem:[#allocation0] sm:$0xf]  }
  0x10   :  { %v45_v8 = vld [vmem:[#allocation0] sm:$0xf]  }
  0x12   :  { %34 = vrot.lane.b32.xlu0 %v33_v6, %s69_s13 }
  0x13   :  { %40 = vrot.lane.b32.xlu1 %v39_v7, %s70_s14 }
  0x16   :  { %46 = vrot.lane.b32.xlu0 %v45_v8, %s71_s15 }
  0x7c   :  { %v11_v9 = vpop.permute.xlu0 %10  }
  0x7d   :  { %v23_v10 = vpop.permute.xlu1 %22   ;;  %51 = vst.msk [vmem:[%s118_s1 + $0x1] ss:$8 sm:$0xf] %vm7_vm0, %v11_v9  }
  0x7e   :  { %53 = vst.msk [vmem:[%s118_s1 + $0x3] ss:$8 sm:$0xf] %vm7_vm0, %v23_v10  }
  0x80   :  { %v17_v11 = vpop.permute.xlu0 %16  }
  0x81   :  { %v29_v12 = vpop.permute.xlu1 %28   ;;  %52 = vst.msk [vmem:[%s118_s1 + $0x2] ss:$8 sm:$0xf] %vm7_vm0, %v17_v11  }
  0x82   :  { %54 = vst.msk [vmem:[%s118_s1 + $0x4] ss:$8 sm:$0xf] %vm7_vm0, %v29_v12  }
  0x84   :  { %v35_v13 = vpop.permute.xlu0 %34  }
  0x85   :  { %v41_v14 = vpop.permute.xlu1 %40   ;;  %55 = vst.msk [vmem:[%s118_s1 + $0x5] ss:$8 sm:$0xf] %vm7_vm0, %v35_v13  }
  0x86   :  { %56 = vst.msk [vmem:[%s118_s1 + $0x6] ss:$8 sm:$0xf] %vm7_vm0, %v41_v14  }
  0x88   :  { %v47_v15 = vpop.permute.xlu0 %46  }
  0x89   :  { %57 = vst.msk [vmem:[%s118_s1 + $0x7] ss:$8 sm:$0xf] %vm7_vm0, %v47_v15  }

// kernel: tile.1
= control target key start
LH: loop header
LB: loop body
LE: loop exit
PB: predicated region body
PF: predicated region fallthrough
CT: control target
= control target key end

     0   :  { %s176_s8 = smov 125   ;;  %s177_s9 = smov 126   ;;  %vm7_vm0 = vcmask 7168   ;;  %s331_s0 = inlined_call_operand.vmem [shape: f32[4,16], index: 0, kind: input, shape index: {}]   ;;  %s332_s1 = inlined_call_operand.vmem [shape: f32[64,1], index: 1, kind: output, shape index: {}]  }
   0x1   :  { %v4_v0 = vld [vmem:[%s331_s0] sm:$0xf]  ;;  %s175_s0 = smov 127   ;;  %s178_s10 = smov 124  }
   0x2   :  { %5 = vst [vmem:[#allocation0] sm:$0xf] %v4_v0  ;;  %s179_s11 = smov 123   ;;  %s180_s12 = smov 122  }
   0x3   :  { %s181_s13 = smov 121   ;;  %s182_s14 = smov 120  }
   0x4   :  { %s183_s19 = smov 119   ;;  %s184_s20 = smov 118  }
   0x5   :  { %s185_s21 = smov 117   ;;  %s186_s22 = smov 116  }
   0x6   :  { %s187_s23 = smov 115   ;;  %s188_s24 = smov 114  }
   0x7   :  { %s189_s25 = smov 113  }
   0x9   :  { %v10_v1 = vld [vmem:[#allocation0] sm:$0xf]  }
   0xa   :  { %v26_v2 = vld [vmem:[#allocation0] sm:$0xf]   ;;  %11 = vrot.lane.b32.xlu0 %v10_v1, %s175_s0 }
   0xb   :  { %27 = vrot.lane.b32.xlu1 %v26_v2, %s176_s8  ;;  %v18_v3 = vld [vmem:[#allocation0] sm:$0xf]  }
   0xc   :  { %v34_v4 = vld [vmem:[#allocation0] sm:$0xf]  }
   0xd   :  { %v42_v5 = vld [vmem:[#allocation0] sm:$0xf]  }
   0xe   :  { %19 = vrot.lane.b32.xlu0 %v18_v3, %s177_s9  ;;  %v50_v6 = vld [vmem:[#allocation0] sm:$0xf]  }
   0xf   :  { %35 = vrot.lane.b32.xlu1 %v34_v4, %s178_s10  ;;  %v58_v7 = vld [vmem:[#allocation0] sm:$0xf]  }
  0x10   :  { %v66_v8 = vld [vmem:[#allocation0] sm:$0xf]  }
  0x11   :  { %v74_v9 = vld [vmem:[#allocation0] sm:$0xf]  }
  0x12   :  { %43 = vrot.lane.b32.xlu0 %v42_v5, %s179_s11  ;;  %v82_v10 = vld [vmem:[#allocation0] sm:$0xf]  }
  0x13   :  { %51 = vrot.lane.b32.xlu1 %v50_v6, %s180_s12  ;;  %v6_v11 = vld [vmem:[#allocation0] sm:$0xf]  }
  0x14   :  { %8 = vst.msk [vmem:[%s332_s1] ss:$16 sm:$0x3] %vm7_vm0, %v6_v11   ;;  %9 = vst.msk [vmem:[%s332_s1] ss:$16 sm:$0xc] %vm7_vm0, %v6_v11  }
  0x15   :  { %v90_v12 = vld [vmem:[#allocation0] sm:$0xf]  }
  0x16   :  { %59 = vrot.lane.b32.xlu0 %v58_v7, %s181_s13  ;;  %v98_v13 = vld [vmem:[#allocation0] sm:$0xf]  }
  0x17   :  { %67 = vrot.lane.b32.xlu1 %v66_v8, %s182_s14  ;;  %v106_v14 = vld [vmem:[#allocation0] sm:$0xf]  }
  0x18   :  { %v114_v15 = vld [vmem:[#allocation0] sm:$0xf]  }
  0x19   :  { %v122_v16 = vld [vmem:[#allocation0] sm:$0xf]  }
  0x1a   :  { %75 = vrot.lane.b32.xlu0 %v74_v9, %s183_s19 }
  0x1b   :  { %83 = vrot.lane.b32.xlu1 %v82_v10, %s184_s20 }
  0x1e   :  { %91 = vrot.lane.b32.xlu0 %v90_v12, %s185_s21 }
  0x1f   :  { %99 = vrot.lane.b32.xlu1 %v98_v13, %s186_s22 }
  0x22   :  { %107 = vrot.lane.b32.xlu0 %v106_v14, %s187_s23 }
  0x23   :  { %115 = vrot.lane.b32.xlu1 %v114_v15, %s188_s24 }
  0x26   :  { %123 = vrot.lane.b32.xlu0 %v122_v16, %s189_s25 }
  0x7c   :  { %v12_v17 = vpop.permute.xlu0 %11  }
  0x7d   :  { %v28_v18 = vpop.permute.xlu1 %27   ;;  %130 = vst.msk [vmem:[%s332_s1 + $0x1] ss:$16 sm:$0x3] %vm7_vm0, %v12_v17   ;;  %131 = vst.msk [vmem:[%s332_s1 + $0x1] ss:$16 sm:$0xc] %vm7_vm0, %v12_v17  }
  0x7e   :  { %134 = vst.msk [vmem:[%s332_s1 + $0x3] ss:$16 sm:$0x3] %vm7_vm0, %v28_v18   ;;  %135 = vst.msk [vmem:[%s332_s1 + $0x3] ss:$16 sm:$0xc] %vm7_vm0, %v28_v18  }
  0x80   :  { %v20_v19 = vpop.permute.xlu0 %19  }
  0x81   :  { %v36_v20 = vpop.permute.xlu1 %35   ;;  %132 = vst.msk [vmem:[%s332_s1 + $0x2] ss:$16 sm:$0x3] %vm7_vm0, %v20_v19   ;;  %133 = vst.msk [vmem:[%s332_s1 + $0x2] ss:$16 sm:$0xc] %vm7_vm0, %v20_v19  }
  0x82   :  { %136 = vst.msk [vmem:[%s332_s1 + $0x4] ss:$16 sm:$0x3] %vm7_vm0, %v36_v20   ;;  %137 = vst.msk [vmem:[%s332_s1 + $0x4] ss:$16 sm:$0xc] %vm7_vm0, %v36_v20  }
  0x84   :  { %v44_v21 = vpop.permute.xlu0 %43  }
  0x85   :  { %v52_v22 = vpop.permute.xlu1 %51   ;;  %138 = vst.msk [vmem:[%s332_s1 + $0x5] ss:$16 sm:$0x3] %vm7_vm0, %v44_v21   ;;  %139 = vst.msk [vmem:[%s332_s1 + $0x5] ss:$16 sm:$0xc] %vm7_vm0, %v44_v21  }
  0x86   :  { %140 = vst.msk [vmem:[%s332_s1 + $0x6] ss:$16 sm:$0x3] %vm7_vm0, %v52_v22   ;;  %141 = vst.msk [vmem:[%s332_s1 + $0x6] ss:$16 sm:$0xc] %vm7_vm0, %v52_v22  }
  0x88   :  { %v60_v23 = vpop.permute.xlu0 %59  }
  0x89   :  { %v68_v24 = vpop.permute.xlu1 %67   ;;  %142 = vst.msk [vmem:[%s332_s1 + $0x7] ss:$16 sm:$0x3] %vm7_vm0, %v60_v23   ;;  %143 = vst.msk [vmem:[%s332_s1 + $0x7] ss:$16 sm:$0xc] %vm7_vm0, %v60_v23  }
  0x8a   :  { %144 = vst.msk [vmem:[%s332_s1 + $0x8] ss:$16 sm:$0x3] %vm7_vm0, %v68_v24   ;;  %145 = vst.msk [vmem:[%s332_s1 + $0x8] ss:$16 sm:$0xc] %vm7_vm0, %v68_v24  }
  0x8c   :  { %v76_v25 = vpop.permute.xlu0 %75  }
  0x8d   :  { %v84_v26 = vpop.permute.xlu1 %83   ;;  %146 = vst.msk [vmem:[%s332_s1 + $0x9] ss:$16 sm:$0x3] %vm7_vm0, %v76_v25   ;;  %147 = vst.msk [vmem:[%s332_s1 + $0x9] ss:$16 sm:$0xc] %vm7_vm0, %v76_v25  }
  0x8e   :  { %148 = vst.msk [vmem:[%s332_s1 + $0xa] ss:$16 sm:$0x3] %vm7_vm0, %v84_v26   ;;  %149 = vst.msk [vmem:[%s332_s1 + $0xa] ss:$16 sm:$0xc] %vm7_vm0, %v84_v26  }
  0x90   :  { %v92_v27 = vpop.permute.xlu0 %91  }
  0x91   :  { %v100_v28 = vpop.permute.xlu1 %99   ;;  %150 = vst.msk [vmem:[%s332_s1 + $0xb] ss:$16 sm:$0x3] %vm7_vm0, %v92_v27   ;;  %151 = vst.msk [vmem:[%s332_s1 + $0xb] ss:$16 sm:$0xc] %vm7_vm0, %v92_v27  }
  0x92   :  { %152 = vst.msk [vmem:[%s332_s1 + $0xc] ss:$16 sm:$0x3] %vm7_vm0, %v100_v28   ;;  %153 = vst.msk [vmem:[%s332_s1 + $0xc] ss:$16 sm:$0xc] %vm7_vm0, %v100_v28  }
  0x94   :  { %v108_v29 = vpop.permute.xlu0 %107  }
  0x95   :  { %v116_v30 = vpop.permute.xlu1 %115   ;;  %154 = vst.msk [vmem:[%s332_s1 + $0xd] ss:$16 sm:$0x3] %vm7_vm0, %v108_v29   ;;  %155 = vst.msk [vmem:[%s332_s1 + $0xd] ss:$16 sm:$0xc] %vm7_vm0, %v108_v29  }
  0x96   :  { %156 = vst.msk [vmem:[%s332_s1 + $0xe] ss:$16 sm:$0x3] %vm7_vm0, %v116_v30   ;;  %157 = vst.msk [vmem:[%s332_s1 + $0xe] ss:$16 sm:$0xc] %vm7_vm0, %v116_v30  }
  0x98   :  { %v124_v31 = vpop.permute.xlu0 %123  }
  0x99   :  { %158 = vst.msk [vmem:[%s332_s1 + $0xf] ss:$16 sm:$0x3] %vm7_vm0, %v124_v31   ;;  %159 = vst.msk [vmem:[%s332_s1 + $0xf] ss:$16 sm:$0xc] %vm7_vm0, %v124_v31  }

// kernel: decoder_forward.4
= control target key start
LH: loop header
LB: loop body
LE: loop exit
PB: predicated region body
PF: predicated region fallthrough
CT: control target
= control target key end

     0   :  { %s910_s18 = smov 0   ;;  %s1064_s0 = inlined_call_operand.vmem [shape: f32[2,32,16], index: 0, kind: input, shape index: {}]   ;;  %s1065_s1 = inlined_call_operand.vmem [shape: f32[64,128], index: 1, kind: input, shape index: {}]   ;;  %s1066_s2 = inlined_call_operand.vmem [shape: f32[64,1], index: 2, kind: input, shape index: {}]   ;;  %s1067_s3 = inlined_call_operand.vmem [shape: f32[2,64,16], index: 3, kind: output, shape index: {0}]   ;;  %s1068_s4 = inlined_call_operand.vmem [shape: f32[2,64,1], index: 4, kind: output, shape index: {1}]   ;;  %s1069_s5 = inlined_call_operand.vmem [shape: f32[2,64,1], index: 5, kind: output, shape index: {2}]  }
   0x1 LB: > { %s698_s19 = sadd.s32 4294967295, %s873_s18   ;;  %p702_p0 = scmp.ge.s32.totalorder %s873_s18, 1  ;;  %s873_s18 = sphi %s910_s18, %s16_s18  }
   0x2   : > { %p192_p1 = scmp.lt.s32.totalorder %s873_s18, 3 }
   0x4   : > { %p193_p2 = pnand %p702_p0, %p192_p1 }
   0x5   : > { %p230_p3 = scmp.lt.s32.totalorder (!%p193_p2), %s698_s19, 1  ;;  %s875_s24 = smov (!%p193_p2), 127   ;;  %v334_v8 = vld [vmem:[%s1065_s1] sm:$0xff] (!%p193_p2)  ;;  %v343_v11 = vld [vmem:[%s1066_s2 + $0x8] sm:$0xff] (!%p193_p2)  ;;  %v878_v12 = vmov (!%p193_p2), 0   ;;  %v345_v13 = vld [vmem:[%s1066_s2 + $0x18] sm:$0xff] (!%p193_p2)  ;;  %v254_v19 = vlaneseq (!%p193_p2) }
   0x6   : > { %196 = sbr.rel (%p193_p2) target bundleno = 551 (0x227), region = 32  ;;  %s876_s25 = smov (!%p193_p2), 124   ;;  %v338_v9 = vld [vmem:[%s1065_s1 + $0x20] sm:$0xff] (!%p193_p2)  ;;  %778 = vmatprep.mubr.f32.mxu0 (!%p193_p2), %v334_v8  ;;  %865 = vset.pattern.permute.xlu0 (!%p193_p2), %v878_v12  ;;  %v344_v14 = vld [vmem:[%s1066_s2 + $0x10] sm:$0xff] (!%p193_p2)  ;;  %v347_v15 = vld [vmem:[%s1066_s2 + $0x28] sm:$0xff] (!%p193_p2)  ;;  %vm287_vm1 = vcmask (!%p193_p2), 121856  }
   0x7   : > { %s877_s26 = smov (!%p193_p2), 123   ;;  %784 = vmatprep.mubr.f32.mxu1 (!%p193_p2), %v338_v9  ;;  %v342_v10 = vld [vmem:[%s1066_s2] sm:$0xff] (!%p193_p2)  ;;  %866 = vset.pattern.permute.xlu1 (!%p193_p2), %v878_v12  ;;  %v349_v17 = vld [vmem:[%s1066_s2 + $0x38] sm:$0xff] (!%p193_p2)  ;;  %v348_v18 = vld [vmem:[%s1066_s2 + $0x30] sm:$0xff] (!%p193_p2)  ;;  %v255_v20 = vand.u32 (!%p193_p2), 127, %v254_v19  ;;  %v879_v24 = vmov (!%p193_p2), 0.0  }
   0x8   : > { %v346_v16 = vld [vmem:[%s1066_s2 + $0x20] sm:$0xff] (!%p193_p2)  ;;  %vm308_vm2 = vcmask (!%p193_p2), 97280   ;;  %vm325_vm3 = vcmask (!%p193_p2), 89088   ;;  %v335_v61 = vld [vmem:[%s1065_s1 + $0x8] sm:$0xff] (!%p193_p2)  ;;  %v336_v63 = vld [vmem:[%s1065_s1 + $0x10] sm:$0xff] (!%p193_p2)  ;;  %vm495_vm5 = vcmask (!%p193_p2), 130048  }
   0x9   : > { %v260_v21 = vand.u32 (!%p193_p2), 3, %v255_v20  ;;  %vm954_vm4 = vmpackc.low (!%p193_p2), %vm308_vm2, %vm308_vm2  ;;  %v339_v62 = vld [vmem:[%s1065_s1 + $0x28] sm:$0xff] (!%p193_p2)  ;;  %vm528_vm6 = vcmask (!%p193_p2), 7168  }
   0xb   : > { %vm268_vm0 = vcmp.lt.s32.totalorder (!%p193_p2), %v260_v21, 3 }
   0xc   : > { %v711_v25 = vsel (!%p193_p2), %vm268_vm0, 1.0, %v879_v24 }
   0xd   : > { %s1073_s19 = smov (!%p230_p3, %s698_s19), 1 }
   0xe   : > { %s718_s20 = sshll.u32 %s1073_s19, 5  ;;  %s997_s11 = sshll.u32 %s1073_s19, 6 }
   0xf   : > { %s234_s23 = scalar_lea.vmem %s1064_s0, %s718_s20  ;;  %s1003_s14 = scalar_lea.vmem %s1067_s3, %s997_s11 }
  0x10   : > { %v252_v0 = vld [vmem:[%s234_s23 + $0x10] sm:$0xff]  ;;  %v250_v1 = vld [vmem:[%s234_s23] sm:$0xff]  ;;  %v251_v2 = vld [vmem:[%s234_s23 + $0x8] sm:$0xff]  ;;  %s244_s16 = scalar_lea.vmem %s1068_s4, %s997_s11  ;;  %s249_s21 = scalar_lea.vmem %s1069_s5, %s997_s11 }
  0x11   : > { %279 = vrot.lane.b32.xlu1 %v252_v0, %s875_s24  ;;  %275 = vrot.lane.b32.xlu0 %v250_v1, %s875_s24  ;;  %v253_v3 = vld [vmem:[%s234_s23 + $0x18] sm:$0xff]  ;;  %v790_v4 = vpack.c.bf16 %v251_v2, %v250_v1  ;;  %v855_v6 = vpack.i.bf16 %v251_v2, %v250_v1 }
  0x12   : > { %v794_v5 = vpack.c.bf16 %v253_v3, %v252_v0  ;;  %v860_v7 = vpack.i.bf16 %v253_v3, %v252_v0 }
  0x13   : > { %791 = vmatprep.subr.bf16.mxu0 %v790_v4  ;;  %826 = vmatprep.subr.bf16.mxu1 %v790_v4 }
  0x14   : > { %793 = vmatpush3.bf16.msra.mxu0 %v790_v4  ;;  %834 = vmatpush3.bf16.msra.mxu1 %v790_v4 }
  0x15   : > { %281 = vrot.lane.b32.xlu1 %v253_v3, %s875_s24  ;;  %277 = vrot.lane.b32.xlu0 %v251_v2, %s875_s24 }
  0x16   : > { %795 = vmatprep.subr.bf16.mxu0 %v794_v5  ;;  %827 = vmatprep.subr.bf16.mxu1 %v794_v5 }
  0x18   : > { %797 = vmatpush3.bf16.msra.mxu0 %v794_v5  ;;  %835 = vmatpush3.bf16.msra.mxu1 %v794_v5 }
  0x19   : > { %856 = vrot.lane.b32.xlu0 %v855_v6, %s876_s25  ;;  %861 = vrot.lane.b32.xlu1 %v860_v7, %s876_s25 }
  0x1d   : > { %315 = vrot.lane.b32.xlu1 %v251_v2, %s877_s26  ;;  %313 = vrot.lane.b32.xlu0 %v250_v1, %s877_s26  ;;  %v337_v1 = vld [vmem:[%s1065_s1 + $0x18] sm:$0xff] }
  0x1e   : > { %v341_v2 = vld [vmem:[%s1065_s1 + $0x38] sm:$0xff] }
  0x21   : > { %319 = vrot.lane.b32.xlu1 %v253_v3, %s877_s26  ;;  %317 = vrot.lane.b32.xlu0 %v252_v0, %s877_s26  ;;  %v340_v0 = vld [vmem:[%s1065_s1 + $0x30] sm:$0xff] }
  0x25   : > { %352 = vperm.xlu0 %865, %v342_v10   ;;  %357 = vperm.xlu1 %866, %v343_v11  }
  0x29   : > { %367 = vperm.xlu0 %865, %v345_v13   ;;  %362 = vperm.xlu1 %866, %v344_v14  }
  0x2d   : > { %377 = vperm.xlu0 %865, %v347_v15   ;;  %372 = vperm.xlu1 %866, %v346_v16  }
  0x31   : > { %387 = vperm.xlu0 %865, %v349_v17   ;;  %382 = vperm.xlu1 %866, %v348_v18  }
  0x83   : > { %v280_v22 = vpop.permute.xlu1 %279  ;;  %v276_v23 = vpop.permute.xlu0 %275 }
  0x84   : > { %v290_v26 = vsel %vm287_vm1, %v280_v22, 0.0  ;;  %v288_v27 = vsel %vm287_vm1, %v276_v23, 0.0 }
  0x85   : > { %v294_v32 = vmul.f32 %v711_v25, %v290_v26  ;;  %v292_v33 = vmul.f32 %v711_v25, %v288_v27 }
  0x87   : > { %v282_v28 = vpop.permute.xlu1 %281  ;;  %v278_v29 = vpop.permute.xlu0 %277 }
  0x88   : > { %v291_v30 = vsel %vm287_vm1, %v282_v28, 0.0  ;;  %v289_v31 = vsel %vm287_vm1, %v278_v29, 0.0 }
  0x89   : > { %v295_v34 = vmul.f32 %v711_v25, %v291_v30  ;;  %v293_v35 = vmul.f32 %v711_v25, %v289_v31 }
  0x8b   : > { %v798_v36 = vpack.c.bf16 %v293_v35, %v292_v33  ;;  %v857_v37 = vpop.permute.xlu0 %856  ;;  %v862_v38 = vpop.permute.xlu1 %861  ;;  %v802_v41 = vpack.c.bf16 %v295_v34, %v294_v32 }
  0x8c   : > { %v859_v39 = vunpack.i.h.bf16 %v857_v37  ;;  %v858_v40 = vunpack.i.l.bf16 %v857_v37  ;;  %v864_v43 = vunpack.i.h.bf16 %v862_v38  ;;  %v863_v44 = vunpack.i.l.bf16 %v862_v38 }
  0x8d   : > { %799 = vmatprep.subr.bf16.mxu0 %v798_v36  ;;  %828 = vmatprep.subr.bf16.mxu1 %v798_v36 }
  0x8e   : > { %801 = vmatpush3.bf16.msra.mxu0 %v798_v36  ;;  %836 = vmatpush3.bf16.msra.mxu1 %v798_v36  ;;  %v806_v42 = vpack.c.bf16 %v859_v39, %v858_v40  ;;  %v812_v50 = vpack.c.bf16 %v864_v43, %v863_v44 }
  0x8f   : > { %803 = vmatprep.subr.bf16.mxu0 %v802_v41  ;;  %829 = vmatprep.subr.bf16.mxu1 %v802_v41  ;;  %v316_v45 = vpop.permute.xlu1 %315  ;;  %v314_v46 = vpop.permute.xlu0 %313 }
  0x90   : > { %v327_v48 = vsel %vm325_vm3, %v316_v45, 0.0  ;;  %v326_v49 = vsel %vm325_vm3, %v314_v46, 0.0 }
  0x91   : > { %v331_v51 = vmul.f32 %v711_v25, %v327_v48  ;;  %v330_v52 = vmul.f32 %v711_v25, %v326_v49 }
  0x92   : > { %805 = vmatpush3.bf16.msra.mxu0 %v802_v41  ;;  %837 = vmatpush3.bf16.msra.mxu1 %v802_v41 }
  0x93   : > { %808 = vmatprep.subr.msk.bf16.mxu0 %vm954_vm4, %v806_v42  ;;  %830 = vmatprep.subr.msk.bf16.mxu1 %vm954_vm4, %v806_v42  ;;  %v320_v53 = vpop.permute.xlu1 %319  ;;  %v318_v54 = vpop.permute.xlu0 %317  ;;  %v818_v57 = vpack.c.bf16 %v331_v51, %v330_v52 }
  0x94   : > { %v329_v55 = vsel %vm325_vm3, %v320_v53, 0.0  ;;  %v328_v56 = vsel %vm325_vm3, %v318_v54, 0.0 }
  0x95   : > { %v333_v58 = vmul.f32 %v711_v25, %v329_v55  ;;  %v332_v59 = vmul.f32 %v711_v25, %v328_v56 }
  0x96   : > { %811 = vmatpush3.bf16.msk.msra.mxu0 %vm954_vm4, %v806_v42  ;;  %838 = vmatpush3.bf16.msk.msra.mxu1 %vm954_vm4, %v806_v42 }
  0x97   : > { %814 = vmatprep.subr.msk.bf16.mxu0 %vm954_vm4, %v812_v50  ;;  %831 = vmatprep.subr.msk.bf16.mxu1 %vm954_vm4, %v812_v50  ;;  %v822_v60 = vpack.c.bf16 %v333_v58, %v332_v59 }
  0x9a   : > { %817 = vmatpush3.bf16.msk.msra.mxu0 %vm954_vm4, %v812_v50  ;;  %839 = vmatpush3.bf16.msk.msra.mxu1 %vm954_vm4, %v812_v50 }
  0x9b   : > { %819 = vmatprep.subr.bf16.mxu0 %v818_v57  ;;  %832 = vmatprep.subr.bf16.mxu1 %v818_v57 }
  0x9e   : > { %821 = vmatpush3.bf16.msra.mxu0 %v818_v57  ;;  %840 = vmatpush3.bf16.msra.mxu1 %v818_v57 }
  0x9f   : > { %823 = vmatprep.subr.bf16.mxu0 %v822_v60  ;;  %833 = vmatprep.subr.bf16.mxu1 %v822_v60 }
  0xa2   : > { %825 = vmatpush3.bf16.msra.mxu0 %v822_v60  ;;  %841 = vmatpush3.bf16.msra.mxu1 %v822_v60 }
  0xa4   : > { %v353_v3 = vpop.permute.xlu0 %352  ;;  %v358_v4 = vpop.permute.xlu1 %357 }
  0xa5   : > { %779 = vmatmul.mubr.f32.vlgmr.msra.gmra.mrb[0].mxu0 %v335_v61  ;;  %785 = vmatmul.mubr.f32.vlgmr.msra.gmra.mrb[0].mxu1 %v339_v62 }
  0xa6   : > { %781 = vmatprep.mubr.f32.mxu0 %v336_v63  ;;  %787 = vmatprep.mubr.f32.mxu1 %v340_v0 }
  0xa8   : > { %v368_v5 = vpop.permute.xlu0 %367  ;;  %v363_v6 = vpop.permute.xlu1 %362 }
  0xa9   : > { %782 = vmatmul.mubr.f32.gmra.mrb[2].mxu0 %v337_v1  ;;  %788 = vmatmul.mubr.f32.gmra.mrb[2].mxu1 %v341_v2 }
  0xac   : > { %v378_v7 = vpop.permute.xlu0 %377  ;;  %v373_v8 = vpop.permute.xlu1 %372 }
  0xb0   : > { %v388_v17 = vpop.permute.xlu0 %387  ;;  %v383_v18 = vpop.permute.xlu1 %382 }
 0x178   : > { %v780_v9 = vpop.f32.mrb[0].mxu0  ;;  %v786_v10 = vpop.f32.mrb[0].mxu1 }
 0x179   : > { %v462_v11 = vadd.f32 %v780_v9, %v358_v4  ;;  %v482_v12 = vadd.f32 %v786_v10, %v378_v7  ;;  %v456_v13 = vpop.f32.mrb[1].mxu0  ;;  %v476_v14 = vpop.f32.mrb[1].mxu1 }
 0x17a   : > { %v457_v15 = vadd.f32 %v456_v13, %v353_v3  ;;  %v477_v16 = vadd.f32 %v476_v14, %v373_v8 }
 0x17b   : > { %497 = vst.msk [vmem:[%s1003_s14 + $0x8] sm:$0xff] %vm495_vm5, %v462_v11  ;;  %501 = vst.msk [vmem:[%s1003_s14 + $0x28] sm:$0xff] %vm495_vm5, %v482_v12  ;;  %v519_v19 = vsel %vm495_vm5, %v482_v12, 0.0  ;;  %v507_v20 = vsel %vm495_vm5, %v462_v11, 0.0  ;;  %v538_v32 = vmul.f32 %v462_v11, %v462_v11  ;;  %v542_v36 = vmul.f32 %v482_v12, %v482_v12 }
 0x17c   : > { %496 = vst.msk [vmem:[%s1003_s14] sm:$0xff] %vm495_vm5, %v457_v15  ;;  %500 = vst.msk [vmem:[%s1003_s14 + $0x20] sm:$0xff] %vm495_vm5, %v477_v16  ;;  %520 = vadd.xlane.f32.xlu1 %v519_v19  ;;  %v789_v21 = vpop.f32.mrb[2].mxu1  ;;  %508 = vadd.xlane.f32.xlu0 %v507_v20  ;;  %v783_v22 = vpop.f32.mrb[2].mxu0  ;;  %v516_v29 = vsel %vm495_vm5, %v477_v16, 0.0  ;;  %v504_v30 = vsel %vm495_vm5, %v457_v15, 0.0  ;;  %v537_v31 = vmul.f32 %v457_v15, %v457_v15 }
 0x17d   : > { %v492_v23 = vadd.f32 %v789_v21, %v388_v17  ;;  %v472_v24 = vadd.f32 %v783_v22, %v368_v5  ;;  %v466_v25 = vpop.f32.mrb[3].mxu0  ;;  %v486_v26 = vpop.f32.mrb[3].mxu1  ;;  %v548_v34 = vsel %vm495_vm5, %v538_v32, 0.0  ;;  %v541_v35 = vmul.f32 %v477_v16, %v477_v16 }
 0x17e   : > { %v467_v27 = vadd.f32 %v466_v25, %v363_v6  ;;  %v487_v28 = vadd.f32 %v486_v26, %v383_v18  ;;  %v545_v33 = vsel %vm495_vm5, %v537_v31, 0.0  ;;  %v560_v38 = vsel %vm495_vm5, %v542_v36, 0.0 }
 0x17f   : > { %503 = vst.msk [vmem:[%s1003_s14 + $0x38] sm:$0xff] %vm495_vm5, %v492_v23  ;;  %499 = vst.msk [vmem:[%s1003_s14 + $0x18] sm:$0xff] %vm495_vm5, %v472_v24  ;;  %v557_v37 = vsel %vm495_vm5, %v541_v35, 0.0  ;;  %v513_v40 = vsel %vm495_vm5, %v472_v24, 0.0  ;;  %v525_v42 = vsel %vm495_vm5, %v492_v23, 0.0  ;;  %v540_v44 = vmul.f32 %v472_v24, %v472_v24 }
 0x180   : > { %498 = vst.msk [vmem:[%s1003_s14 + $0x10] sm:$0xff] %vm495_vm5, %v467_v27  ;;  %502 = vst.msk [vmem:[%s1003_s14 + $0x30] sm:$0xff] %vm495_vm5, %v487_v28  ;;  %517 = vadd.xlane.f32.xlu0 %v516_v29  ;;  %505 = vadd.xlane.f32.xlu1 %v504_v30  ;;  %v510_v39 = vsel %vm495_vm5, %v467_v27, 0.0  ;;  %v522_v41 = vsel %vm495_vm5, %v487_v28, 0.0  ;;  %v539_v43 = vmul.f32 %v467_v27, %v467_v27 }
 0x181   : > { %v554_v46 = vsel %vm495_vm5, %v540_v44, 0.0  ;;  %v543_v47 = vmul.f32 %v487_v28, %v487_v28  ;;  %v544_v48 = vmul.f32 %v492_v23, %v492_v23 }
 0x182   : > { %v551_v45 = vsel %vm495_vm5, %v539_v43, 0.0 }
 0x183   : > { %v563_v49 = vsel %vm495_vm5, %v543_v47, 0.0  ;;  %v566_v50 = vsel %vm495_vm5, %v544_v48, 0.0 }
 0x184   : > { %546 = vadd.xlane.f32.xlu0 %v545_v33  ;;  %549 = vadd.xlane.f32.xlu1 %v548_v34 }
 0x188   : > { %558 = vadd.xlane.f32.xlu0 %v557_v37  ;;  %561 = vadd.xlane.f32.xlu1 %v560_v38 }
 0x18c   : > { %511 = vadd.xlane.f32.xlu0 %v510_v39  ;;  %514 = vadd.xlane.f32.xlu1 %v513_v40 }
 0x190   : > { %523 = vadd.xlane.f32.xlu0 %v522_v41  ;;  %526 = vadd.xlane.f32.xlu1 %v525_v42 }
 0x194   : > { %552 = vadd.xlane.f32.xlu0 %v551_v45  ;;  %555 = vadd.xlane.f32.xlu1 %v554_v46 }
 0x198   : > { %564 = vadd.xlane.f32.xlu0 %v563_v49  ;;  %567 = vadd.xlane.f32.xlu1 %v566_v50 }
 0x209   : > { %v521_v51 = vpop.xlane.xlu1 %520  ;;  %v509_v52 = vpop.xlane.xlu0 %508 }
 0x20a   : > { %534 = vst.msk [vmem:[%s244_s16 + $0x28] sm:$0xff] %vm528_vm6, %v521_v51  ;;  %530 = vst.msk [vmem:[%s244_s16 + $0x8] sm:$0xff] %vm528_vm6, %v509_v52 }
 0x20d   : > { %v518_v53 = vpop.xlane.xlu0 %517  ;;  %v506_v54 = vpop.xlane.xlu1 %505 }
 0x20e   : > { %533 = vst.msk [vmem:[%s244_s16 + $0x20] sm:$0xff] %vm528_vm6, %v518_v53  ;;  %529 = vst.msk [vmem:[%s244_s16] sm:$0xff] %vm528_vm6, %v506_v54 }
 0x211   : > { %v547_v55 = vpop.xlane.xlu0 %546  ;;  %v550_v56 = vpop.xlane.xlu1 %549 }
 0x212   : > { %569 = vst.msk [vmem:[%s249_s21] sm:$0xff] %vm528_vm6, %v547_v55  ;;  %570 = vst.msk [vmem:[%s249_s21 + $0x8] sm:$0xff] %vm528_vm6, %v550_v56 }
 0x215   : > { %v559_v57 = vpop.xlane.xlu0 %558  ;;  %v562_v58 = vpop.xlane.xlu1 %561 }
 0x216   : > { %573 = vst.msk [vmem:[%s249_s21 + $0x20] sm:$0xff] %vm528_vm6, %v559_v57  ;;  %574 = vst.msk [vmem:[%s249_s21 + $0x28] sm:$0xff] %vm528_vm6, %v562_v58 }
 0x219   : > { %v512_v59 = vpop.xlane.xlu0 %511  ;;  %v515_v60 = vpop.xlane.xlu1 %514 }
 0x21a   : > { %531 = vst.msk [vmem:[%s244_s16 + $0x10] sm:$0xff] %vm528_vm6, %v512_v59  ;;  %532 = vst.msk [vmem:[%s244_s16 + $0x18] sm:$0xff] %vm528_vm6, %v515_v60 }
 0x21d   : > { %v524_v61 = vpop.xlane.xlu0 %523  ;;  %v527_v62 = vpop.xlane.xlu1 %526 }
 0x21e   : > { %535 = vst.msk [vmem:[%s244_s16 + $0x30] sm:$0xff] %vm528_vm6, %v524_v61  ;;  %536 = vst.msk [vmem:[%s244_s16 + $0x38] sm:$0xff] %vm528_vm6, %v527_v62 }
 0x221   : > { %v553_v63 = vpop.xlane.xlu0 %552  ;;  %v556_v0 = vpop.xlane.xlu1 %555 }
 0x222   : > { %571 = vst.msk [vmem:[%s249_s21 + $0x10] sm:$0xff] %vm528_vm6, %v553_v63  ;;  %572 = vst.msk [vmem:[%s249_s21 + $0x18] sm:$0xff] %vm528_vm6, %v556_v0 }
 0x225   : > { %v565_v1 = vpop.xlane.xlu0 %564  ;;  %v568_v2 = vpop.xlane.xlu1 %567 }
 0x226   : > { %575 = vst.msk [vmem:[%s249_s21 + $0x30] sm:$0xff] %vm528_vm6, %v565_v1  ;;  %576 = vst.msk [vmem:[%s249_s21 + $0x38] sm:$0xff] %vm528_vm6, %v568_v2 }
 0x227 PF: > { %s16_s18 = sadd.s32 1, %s873_s18  }
 0x228   : > { %p13_p4 = scmp.ge.s32.totalorder %s16_s18, 4  }
 0x22a   :  { %15 = sbr.rel (!%p13_p4) target bundleno = 1 (0x1), region = 86 }

// kernel: decoder_forward.5
= control target key start
LH: loop header
LB: loop body
LE: loop exit
PB: predicated region body
PF: predicated region fallthrough
CT: control target
= control target key end

     0   :  { %s951_s24 = smov 0   ;;  %s1101_s0 = inlined_call_operand.vmem [shape: f32[2,16,64], index: 0, kind: input, shape index: {}]   ;;  %s1102_s1 = inlined_call_operand.vmem [shape: f32[64,64], index: 1, kind: input, shape index: {}]   ;;  %s1103_s2 = inlined_call_operand.vmem [shape: f32[64,1], index: 2, kind: input, shape index: {}]   ;;  %s1104_s3 = inlined_call_operand.vmem [shape: f32[16,1], index: 3, kind: input, shape index: {}]   ;;  %s1105_s4 = inlined_call_operand.vmem [shape: f32[16,1], index: 4, kind: input, shape index: {}]   ;;  %s1106_s5 = inlined_call_operand.vmem [shape: f32[2,64,64], index: 5, kind: output, shape index: {0}]   ;;  %s1107_s6 = inlined_call_operand.vmem [shape: f32[2,64,1], index: 6, kind: output, shape index: {1}]   ;;  %s1108_s7 = inlined_call_operand.vmem [shape: f32[2,64,1], index: 7, kind: output, shape index: {2}]  }
   0x1 LB: > { %s778_s25 = sadd.s32 4294967295, %s904_s24   ;;  %p782_p0 = scmp.ge.s32.totalorder %s904_s24, 1  ;;  %s904_s24 = sphi %s951_s24, %s18_s24  }
   0x2   : > { %p242_p1 = scmp.lt.s32.totalorder %s904_s24, 3 }
   0x4   : > { %p243_p2 = pnand %p782_p0, %p242_p1 }
   0x5   : > { %v320_v0 = vld [vmem:[%s1105_s4] sm:$0xff] (!%p243_p2)  ;;  %v906_v2 = vmov (!%p243_p2), 0   ;;  %v321_v3 = vld [vmem:[%s1105_s4 + $0x8] sm:$0xff] (!%p243_p2)  ;;  %p284_p3 = scmp.lt.s32.totalorder (!%p243_p2), %s778_s25, 1  ;;  %s907_s15 = smov (!%p243_p2), 127   ;;  %vm446_vm2 = vcmask (!%p243_p2), 523264   ;;  %v340_v31 = vlaneseq (!%p243_p2) }
   0x6   : > { %246 = sbr.rel (%p243_p2) target bundleno = 664 (0x298), region = 40  ;;  %v306_v1 = vld [vmem:[%s1104_s3] sm:$0xff] (!%p243_p2)  ;;  %892 = vset.pattern.permute.xlu1 (!%p243_p2), %v906_v2  ;;  %891 = vset.pattern.permute.xlu0 (!%p243_p2), %v906_v2  ;;  %v307_v4 = vld [vmem:[%s1104_s3 + $0x8] sm:$0xff] (!%p243_p2)  ;;  %s908_s16 = smov (!%p243_p2), 120   ;;  %v400_v25 = vld [vmem:[%s1103_s2 + $0x10] sm:$0xff] (!%p243_p2)  ;;  %vm365_vm4 = vcmask (!%p243_p2), 515072  }
   0x7   : > { %324 = vperm.xlu1 (!%p243_p2), %892, %v320_v0   ;;  %310 = vperm.xlu0 (!%p243_p2), %891, %v306_v1   ;;  %v390_v21 = vld [vmem:[%s1102_s1] sm:$0xff] (!%p243_p2)  ;;  %s909_s21 = smov (!%p243_p2), 119   ;;  %v399_v24 = vld [vmem:[%s1103_s2 + $0x8] sm:$0xff] (!%p243_p2)  ;;  %v401_v26 = vld [vmem:[%s1103_s2 + $0x18] sm:$0xff] (!%p243_p2)  ;;  %v341_v32 = vand.u32 (!%p243_p2), 127, %v340_v31  ;;  %v910_v35 = vmov (!%p243_p2), 0.0  }
   0x8   : > { %v394_v22 = vld [vmem:[%s1102_s1 + $0x20] sm:$0xff] (!%p243_p2)  ;;  %840 = vmatprep.mubr.msk.f32.mxu0 (!%p243_p2), %vm446_vm2, %v390_v21  ;;  %v403_v28 = vld [vmem:[%s1103_s2 + $0x28] sm:$0xff] (!%p243_p2)  ;;  %v404_v29 = vld [vmem:[%s1103_s2 + $0x30] sm:$0xff] (!%p243_p2)  ;;  %vm385_vm5 = vcmask (!%p243_p2), 449536   ;;  %vm376_vm6 = vcmask (!%p243_p2), 457728   ;;  %vm608_vm8 = vcmask (!%p243_p2), 7168  }
   0x9   : > { %v398_v23 = vld [vmem:[%s1103_s2] sm:$0xff] (!%p243_p2)  ;;  %846 = vmatprep.mubr.msk.f32.mxu1 (!%p243_p2), %vm446_vm2, %v394_v22  ;;  %v405_v30 = vld [vmem:[%s1103_s2 + $0x38] sm:$0xff] (!%p243_p2)  ;;  %v346_v33 = vand.u32 (!%p243_p2), 7, %v341_v32  ;;  %vm861_vm7 = vmpackc.low (!%p243_p2), %vm376_vm6, %vm376_vm6 }
   0xa   : > { %v402_v27 = vld [vmem:[%s1103_s2 + $0x20] sm:$0xff] (!%p243_p2)  ;;  %v391_v54 = vld [vmem:[%s1102_s1 + $0x8] sm:$0xff] (!%p243_p2)  ;;  %v392_v56 = vld [vmem:[%s1102_s1 + $0x10] sm:$0xff] (!%p243_p2) }
   0xb   : > { %329 = vperm.xlu1 (!%p243_p2), %892, %v321_v3   ;;  %315 = vperm.xlu0 (!%p243_p2), %891, %v307_v4   ;;  %vm354_vm3 = vcmp.lt.s32.totalorder (!%p243_p2), %v346_v33, 7  ;;  %v395_v55 = vld [vmem:[%s1102_s1 + $0x28] sm:$0xff] (!%p243_p2)  ;;  %v396_v57 = vld [vmem:[%s1102_s1 + $0x30] sm:$0xff] (!%p243_p2)  ;;  %v393_v58 = vld [vmem:[%s1102_s1 + $0x18] sm:$0xff] (!%p243_p2) }
   0xc   : > { %v791_v36 = vsel (!%p243_p2), %vm354_vm3, 1.0, %v910_v35  ;;  %v397_v59 = vld [vmem:[%s1102_s1 + $0x38] sm:$0xff] (!%p243_p2) }
   0xd   : > { %s1110_s25 = smov (!%p284_p3, %s778_s25), 1 }
   0xe   : > { %s804_s11 = sshll.u32 %s1110_s25, 4  ;;  %s1034_s8 = sshll.u32 %s1110_s25, 6 }
   0xf   : > { %s288_s14 = scalar_lea.vmem %s1101_s0, %s804_s11  ;;  %s1040_s11 = scalar_lea.vmem %s1106_s5, %s1034_s8 }
  0x10   : > { %v304_v5 = vld [vmem:[%s288_s14] sm:$0xff]  ;;  %v305_v9 = vld [vmem:[%s288_s14 + $0x8] sm:$0xff]  ;;  %s298_s13 = scalar_lea.vmem %s1107_s6, %s1034_s8 }
  0x86   : > { %v325_v6 = vpop.permute.xlu1 %324  ;;  %v311_v7 = vpop.permute.xlu0 %310 }
  0x87   : > { %v318_v8 = vmul.f32 %v311_v7, %v304_v5 }
  0x89   : > { %v332_v10 = vadd.f32 %v325_v6, %v318_v8 }
  0x8a   : > { %v316_v11 = vpop.permute.xlu0 %315  ;;  %v330_v14 = vpop.permute.xlu1 %329 }
  0x8b   : > { %v336_v12 = vmul.f32 0.01, %v332_v10  ;;  %v319_v13 = vmul.f32 %v316_v11, %v305_v9  ;;  %vm334_vm0 = vcmp.ge.f32.partialorder %v332_v10, 0.0 }
  0x8d   : > { %v333_v15 = vadd.f32 %v330_v14, %v319_v13  ;;  %v338_v16 = vsel %vm334_vm0, %v332_v10, %v336_v12 }
  0x8e   : > { %359 = vrot.lane.b32.xlu0 %v338_v16, %s907_s15 }
  0x8f   : > { %v337_v17 = vmul.f32 0.01, %v333_v15  ;;  %vm335_vm1 = vcmp.ge.f32.partialorder %v333_v15, 0.0 }
  0x91   : > { %v339_v18 = vsel %vm335_vm1, %v333_v15, %v337_v17 }
  0x92   : > { %361 = vrot.lane.b32.xlu1 %v339_v18, %s907_s15  ;;  %v893_v19 = vpack.i.bf16 %v339_v18, %v338_v16  ;;  %v852_v20 = vpack.c.bf16 %v339_v18, %v338_v16 }
  0x94   : > { %894 = vrot.lane.b32.xlu0 %v893_v19, %s908_s16  ;;  %853 = vmatprep.subr.bf16.mxu0 %v852_v20  ;;  %s303_s16 = scalar_lea.vmem %s1108_s7, %s1034_s8 }
  0x95   : > { %870 = vmatprep.subr.bf16.mxu1 %v852_v20  ;;  %855 = vmatpush3.bf16.msra.mxu0 %v852_v20 }
  0x96   : > { %874 = vmatpush3.bf16.msra.mxu1 %v852_v20  ;;  %379 = vrot.lane.b32.xlu1 %v338_v16, %s909_s21 }
  0x98   : > { %381 = vrot.lane.b32.xlu0 %v339_v18, %s909_s21 }
  0x9a   : > { %408 = vperm.xlu1 %892, %v398_v23  }
  0x9c   : > { %413 = vperm.xlu0 %891, %v399_v24  }
  0x9e   : > { %418 = vperm.xlu1 %892, %v400_v25  }
  0xa0   : > { %423 = vperm.xlu0 %891, %v401_v26  }
  0xa2   : > { %428 = vperm.xlu1 %892, %v402_v27  }
  0xa4   : > { %433 = vperm.xlu0 %891, %v403_v28  }
  0xa6   : > { %438 = vperm.xlu1 %892, %v404_v29  }
  0xa8   : > { %443 = vperm.xlu0 %891, %v405_v30  }
 0x100   : > { %v360_v34 = vpop.permute.xlu0 %359 }
 0x101   : > { %v366_v37 = vsel %vm365_vm4, %v360_v34, 0.0 }
 0x102   : > { %v368_v40 = vmul.f32 %v791_v36, %v366_v37 }
 0x104   : > { %v362_v38 = vpop.permute.xlu1 %361 }
 0x105   : > { %v367_v39 = vsel %vm365_vm4, %v362_v38, 0.0 }
 0x106   : > { %v369_v41 = vmul.f32 %v791_v36, %v367_v39  ;;  %v895_v42 = vpop.permute.xlu0 %894 }
 0x107   : > { %v897_v43 = vunpack.i.h.bf16 %v895_v42  ;;  %v896_v44 = vunpack.i.l.bf16 %v895_v42 }
 0x108   : > { %v856_v45 = vpack.c.bf16 %v369_v41, %v368_v40  ;;  %v380_v46 = vpop.permute.xlu1 %379 }
 0x109   : > { %v860_v47 = vpack.c.bf16 %v897_v43, %v896_v44  ;;  %v386_v48 = vsel %vm385_vm5, %v380_v46, 0.0 }
 0x10a   : > { %v382_v49 = vpop.permute.xlu0 %381  ;;  %857 = vmatprep.subr.bf16.mxu0 %v856_v45  ;;  %871 = vmatprep.subr.bf16.mxu1 %v856_v45  ;;  %v388_v51 = vmul.f32 %v791_v36, %v386_v48 }
 0x10b   : > { %v387_v50 = vsel %vm385_vm5, %v382_v49, 0.0  ;;  %859 = vmatpush3.bf16.msra.mxu0 %v856_v45  ;;  %875 = vmatpush3.bf16.msra.mxu1 %v856_v45 }
 0x10c   : > { %v389_v52 = vmul.f32 %v791_v36, %v387_v50  ;;  %862 = vmatprep.subr.msk.bf16.mxu0 %vm861_vm7, %v860_v47  ;;  %872 = vmatprep.subr.msk.bf16.mxu1 %vm861_vm7, %v860_v47 }
 0x10e   : > { %v866_v53 = vpack.c.bf16 %v389_v52, %v388_v51 }
 0x10f   : > { %865 = vmatpush3.bf16.msk.msra.mxu0 %vm861_vm7, %v860_v47  ;;  %876 = vmatpush3.bf16.msk.msra.mxu1 %vm861_vm7, %v860_v47 }
 0x110   : > { %867 = vmatprep.subr.bf16.mxu0 %v866_v53  ;;  %873 = vmatprep.subr.bf16.mxu1 %v866_v53 }
 0x113   : > { %869 = vmatpush3.bf16.msra.mxu0 %v866_v53  ;;  %877 = vmatpush3.bf16.msra.mxu1 %v866_v53 }
 0x116   : > { %841 = vmatmul.mubr.msk.f32.vlgmr.msra.gmra.mrb[0].mxu0 %vm446_vm2, %v391_v54  ;;  %847 = vmatmul.mubr.msk.f32.vlgmr.msra.gmra.mrb[0].mxu1 %vm446_vm2, %v395_v55 }
 0x117   : > { %843 = vmatprep.mubr.msk.f32.mxu0 %vm446_vm2, %v392_v56  ;;  %849 = vmatprep.mubr.msk.f32.mxu1 %vm446_vm2, %v396_v57 }
 0x119   : > { %v409_v60 = vpop.permute.xlu1 %408 }
 0x11a   : > { %844 = vmatmul.mubr.msk.f32.gmra.mrb[2].mxu0 %vm446_vm2, %v393_v58  ;;  %850 = vmatmul.mubr.msk.f32.gmra.mrb[2].mxu1 %vm446_vm2, %v397_v59 }
 0x11b   : > { %v414_v61 = vpop.permute.xlu0 %413 }
 0x11d   : > { %v419_v62 = vpop.permute.xlu1 %418 }
 0x11f   : > { %v424_v63 = vpop.permute.xlu0 %423 }
 0x121   : > { %v429_v0 = vpop.permute.xlu1 %428 }
 0x123   : > { %v434_v1 = vpop.permute.xlu0 %433 }
 0x125   : > { %v439_v10 = vpop.permute.xlu1 %438 }
 0x127   : > { %v444_v11 = vpop.permute.xlu0 %443 }
 0x1e9   : > { %v842_v2 = vpop.f32.mrb[0].mxu0  ;;  %v848_v3 = vpop.f32.mrb[0].mxu1 }
 0x1ea   : > { %v543_v4 = vadd.f32 %v842_v2, %v414_v61  ;;  %v563_v5 = vadd.f32 %v848_v3, %v434_v1  ;;  %v537_v6 = vpop.f32.mrb[1].mxu0  ;;  %v557_v7 = vpop.f32.mrb[1].mxu1 }
 0x1eb   : > { %v538_v8 = vadd.f32 %v537_v6, %v409_v60  ;;  %v558_v9 = vadd.f32 %v557_v7, %v429_v0 }
 0x1ec   : > { %577 = vst.msk [vmem:[%s1040_s11 + $0x8] sm:$0xff] %vm446_vm2, %v543_v4  ;;  %581 = vst.msk [vmem:[%s1040_s11 + $0x28] sm:$0xff] %vm446_vm2, %v563_v5  ;;  %v599_v12 = vsel %vm446_vm2, %v563_v5, 0.0  ;;  %v587_v13 = vsel %vm446_vm2, %v543_v4, 0.0  ;;  %v618_v25 = vmul.f32 %v543_v4, %v543_v4  ;;  %v622_v29 = vmul.f32 %v563_v5, %v563_v5 }
 0x1ed   : > { %576 = vst.msk [vmem:[%s1040_s11] sm:$0xff] %vm446_vm2, %v538_v8  ;;  %580 = vst.msk [vmem:[%s1040_s11 + $0x20] sm:$0xff] %vm446_vm2, %v558_v9  ;;  %600 = vadd.xlane.f32.xlu1 %v599_v12  ;;  %v851_v14 = vpop.f32.mrb[2].mxu1  ;;  %588 = vadd.xlane.f32.xlu0 %v587_v13  ;;  %v845_v15 = vpop.f32.mrb[2].mxu0  ;;  %v596_v22 = vsel %vm446_vm2, %v558_v9, 0.0  ;;  %v584_v23 = vsel %vm446_vm2, %v538_v8, 0.0  ;;  %v617_v24 = vmul.f32 %v538_v8, %v538_v8 }
 0x1ee   : > { %v573_v16 = vadd.f32 %v851_v14, %v444_v11  ;;  %v553_v17 = vadd.f32 %v845_v15, %v424_v63  ;;  %v547_v18 = vpop.f32.mrb[3].mxu0  ;;  %v567_v19 = vpop.f32.mrb[3].mxu1  ;;  %v628_v27 = vsel %vm446_vm2, %v618_v25, 0.0  ;;  %v621_v28 = vmul.f32 %v558_v9, %v558_v9 }
 0x1ef   : > { %v548_v20 = vadd.f32 %v547_v18, %v419_v62  ;;  %v568_v21 = vadd.f32 %v567_v19, %v439_v10  ;;  %v625_v26 = vsel %vm446_vm2, %v617_v24, 0.0  ;;  %v640_v31 = vsel %vm446_vm2, %v622_v29, 0.0 }
 0x1f0   : > { %583 = vst.msk [vmem:[%s1040_s11 + $0x38] sm:$0xff] %vm446_vm2, %v573_v16  ;;  %579 = vst.msk [vmem:[%s1040_s11 + $0x18] sm:$0xff] %vm446_vm2, %v553_v17  ;;  %v637_v30 = vsel %vm446_vm2, %v621_v28, 0.0  ;;  %v593_v33 = vsel %vm446_vm2, %v553_v17, 0.0  ;;  %v605_v35 = vsel %vm446_vm2, %v573_v16, 0.0  ;;  %v620_v37 = vmul.f32 %v553_v17, %v553_v17 }
 0x1f1   : > { %578 = vst.msk [vmem:[%s1040_s11 + $0x10] sm:$0xff] %vm446_vm2, %v548_v20  ;;  %582 = vst.msk [vmem:[%s1040_s11 + $0x30] sm:$0xff] %vm446_vm2, %v568_v21  ;;  %597 = vadd.xlane.f32.xlu0 %v596_v22  ;;  %585 = vadd.xlane.f32.xlu1 %v584_v23  ;;  %v590_v32 = vsel %vm446_vm2, %v548_v20, 0.0  ;;  %v602_v34 = vsel %vm446_vm2, %v568_v21, 0.0  ;;  %v619_v36 = vmul.f32 %v548_v20, %v548_v20 }
 0x1f2   : > { %v634_v39 = vsel %vm446_vm2, %v620_v37, 0.0  ;;  %v623_v40 = vmul.f32 %v568_v21, %v568_v21  ;;  %v624_v41 = vmul.f32 %v573_v16, %v573_v16 }
 0x1f3   : > { %v631_v38 = vsel %vm446_vm2, %v619_v36, 0.0 }
 0x1f4   : > { %v643_v42 = vsel %vm446_vm2, %v623_v40, 0.0  ;;  %v646_v43 = vsel %vm446_vm2, %v624_v41, 0.0 }
 0x1f5   : > { %626 = vadd.xlane.f32.xlu0 %v625_v26  ;;  %629 = vadd.xlane.f32.xlu1 %v628_v27 }
 0x1f9   : > { %638 = vadd.xlane.f32.xlu0 %v637_v30  ;;  %641 = vadd.xlane.f32.xlu1 %v640_v31 }
 0x1fd   : > { %591 = vadd.xlane.f32.xlu0 %v590_v32  ;;  %594 = vadd.xlane.f32.xlu1 %v593_v33 }
 0x201   : > { %603 = vadd.xlane.f32.xlu0 %v602_v34  ;;  %606 = vadd.xlane.f32.xlu1 %v605_v35 }
 0x205   : > { %632 = vadd.xlane.f32.xlu0 %v631_v38  ;;  %635 = vadd.xlane.f32.xlu1 %v634_v39 }
 0x209   : > { %644 = vadd.xlane.f32.xlu0 %v643_v42  ;;  %647 = vadd.xlane.f32.xlu1 %v646_v43 }
 0x27a   : > { %v601_v44 = vpop.xlane.xlu1 %600  ;;  %v589_v45 = vpop.xlane.xlu0 %588 }
 0x27b   : > { %614 = vst.msk [vmem:[%s298_s13 + $0x28] sm:$0xff] %vm608_vm8, %v601_v44  ;;  %610 = vst.msk [vmem:[%s298_s13 + $0x8] sm:$0xff] %vm608_vm8, %v589_v45 }
 0x27e   : > { %v598_v46 = vpop.xlane.xlu0 %597  ;;  %v586_v47 = vpop.xlane.xlu1 %585 }
 0x27f   : > { %613 = vst.msk [vmem:[%s298_s13 + $0x20] sm:$0xff] %vm608_vm8, %v598_v46  ;;  %609 = vst.msk [vmem:[%s298_s13] sm:$0xff] %vm608_vm8, %v586_v47 }
 0x282   : > { %v627_v48 = vpop.xlane.xlu0 %626  ;;  %v630_v49 = vpop.xlane.xlu1 %629 }
 0x283   : > { %649 = vst.msk [vmem:[%s303_s16] sm:$0xff] %vm608_vm8, %v627_v48  ;;  %650 = vst.msk [vmem:[%s303_s16 + $0x8] sm:$0xff] %vm608_vm8, %v630_v49 }
 0x286   : > { %v639_v50 = vpop.xlane.xlu0 %638  ;;  %v642_v51 = vpop.xlane.xlu1 %641 }
 0x287   : > { %653 = vst.msk [vmem:[%s303_s16 + $0x20] sm:$0xff] %vm608_vm8, %v639_v50  ;;  %654 = vst.msk [vmem:[%s303_s16 + $0x28] sm:$0xff] %vm608_vm8, %v642_v51 }
 0x28a   : > { %v592_v52 = vpop.xlane.xlu0 %591  ;;  %v595_v53 = vpop.xlane.xlu1 %594 }
 0x28b   : > { %611 = vst.msk [vmem:[%s298_s13 + $0x10] sm:$0xff] %vm608_vm8, %v592_v52  ;;  %612 = vst.msk [vmem:[%s298_s13 + $0x18] sm:$0xff] %vm608_vm8, %v595_v53 }
 0x28e   : > { %v604_v54 = vpop.xlane.xlu0 %603  ;;  %v607_v55 = vpop.xlane.xlu1 %606 }
 0x28f   : > { %615 = vst.msk [vmem:[%s298_s13 + $0x30] sm:$0xff] %vm608_vm8, %v604_v54  ;;  %616 = vst.msk [vmem:[%s298_s13 + $0x38] sm:$0xff] %vm608_vm8, %v607_v55 }
 0x292   : > { %v633_v56 = vpop.xlane.xlu0 %632  ;;  %v636_v57 = vpop.xlane.xlu1 %635 }
 0x293   : > { %651 = vst.msk [vmem:[%s303_s16 + $0x10] sm:$0xff] %vm608_vm8, %v633_v56  ;;  %652 = vst.msk [vmem:[%s303_s16 + $0x18] sm:$0xff] %vm608_vm8, %v636_v57 }
 0x296   : > { %v645_v58 = vpop.xlane.xlu0 %644  ;;  %v648_v59 = vpop.xlane.xlu1 %647 }
 0x297   : > { %655 = vst.msk [vmem:[%s303_s16 + $0x30] sm:$0xff] %vm608_vm8, %v645_v58  ;;  %656 = vst.msk [vmem:[%s303_s16 + $0x38] sm:$0xff] %vm608_vm8, %v648_v59 }
 0x298 PF: > { %s18_s24 = sadd.s32 1, %s904_s24  }
 0x299   : > { %p15_p4 = scmp.ge.s32.totalorder %s18_s24, 4  }
 0x29b   :  { %17 = sbr.rel (!%p15_p4) target bundleno = 1 (0x1), region = 94 }

// kernel: decoder_forward.6
= control target key start
LH: loop header
LB: loop body
LE: loop exit
PB: predicated region body
PF: predicated region fallthrough
CT: control target
= control target key end

     0   :  { %s878_s24 = smov 0   ;;  %s978_s0 = inlined_call_operand.vmem [shape: f32[2,16,256], index: 0, kind: input, shape index: {}]   ;;  %s979_s1 = inlined_call_operand.vmem [shape: f32[32,64], index: 1, kind: input, shape index: {}]   ;;  %s980_s2 = inlined_call_operand.vmem [shape: f32[32,1], index: 2, kind: input, shape index: {}]   ;;  %s981_s3 = inlined_call_operand.vmem [shape: f32[16,1], index: 3, kind: input, shape index: {}]   ;;  %s982_s4 = inlined_call_operand.vmem [shape: f32[16,1], index: 4, kind: input, shape index: {}]   ;;  %s983_s5 = inlined_call_operand.vmem [shape: f32[2,32,256], index: 5, kind: output, shape index: {0}]   ;;  %s984_s6 = inlined_call_operand.vmem [shape: f32[2,32,1], index: 6, kind: output, shape index: {1}]   ;;  %s985_s7 = inlined_call_operand.vmem [shape: f32[2,32,1], index: 7, kind: output, shape index: {2}]  }
   0x1 LB: > { %s748_s25 = sadd.s32 4294967295, %s831_s24   ;;  %p752_p0 = scmp.ge.s32.totalorder %s831_s24, 1  ;;  %s831_s24 = sphi %s878_s24, %s18_s24  }
   0x2   : > { %p242_p1 = scmp.lt.s32.totalorder %s831_s24, 3 }
   0x4   : > { %p243_p2 = pnand %p752_p0, %p242_p1 }
   0x5   : > { %v324_v0 = vld [vmem:[%s982_s4] sm:$0xff] (!%p243_p2)  ;;  %v833_v2 = vmov (!%p243_p2), 0   ;;  %v325_v3 = vld [vmem:[%s982_s4 + $0x8] sm:$0xff] (!%p243_p2)  ;;  %v834_v5 = vmov (!%p243_p2), 0.0   ;;  %p284_p3 = scmp.lt.s32.totalorder (!%p243_p2), %s748_s25, 1  ;;  %s835_s15 = smov (!%p243_p2), 127   ;;  %v352_v38 = vlaneseq (!%p243_p2) }
   0x6   : > { %246 = sbr.rel (%p243_p2) target bundleno = 661 (0x295), region = 40  ;;  %v308_v1 = vld [vmem:[%s981_s3] sm:$0xff] (!%p243_p2)  ;;  %814 = vset.pattern.permute.xlu1 (!%p243_p2), %v833_v2  ;;  %813 = vset.pattern.permute.xlu0 (!%p243_p2), %v833_v2  ;;  %v309_v4 = vld [vmem:[%s981_s3 + $0x8] sm:$0xff] (!%p243_p2)  ;;  %s836_s16 = smov (!%p243_p2), 112   ;;  %v454_v36 = vld [vmem:[%s980_s2 + $0x10] sm:$0xff] (!%p243_p2)  ;;  %vm397_vm5 = vcmask (!%p243_p2), 1039360  }
   0x7   : > { %328 = vperm.xlu1 (!%p243_p2), %814, %v324_v0   ;;  %312 = vperm.xlu0 (!%p243_p2), %813, %v308_v1   ;;  %s837_s17 = smov (!%p243_p2), 111   ;;  %v452_v34 = vld [vmem:[%s980_s2] sm:$0xff] (!%p243_p2)  ;;  %v453_v35 = vld [vmem:[%s980_s2 + $0x8] sm:$0xff] (!%p243_p2)  ;;  %v455_v37 = vld [vmem:[%s980_s2 + $0x18] sm:$0xff] (!%p243_p2)  ;;  %v353_v39 = vand.u32 (!%p243_p2), 127, %v352_v38  ;;  %vm435_vm7 = vcmask (!%p243_p2), 908288  }
   0x8   : > { %553 = vmatprep.mubr.f32.mxu0 (!%p243_p2), %v834_v5  ;;  %565 = vmatprep.mubr.f32.mxu1 (!%p243_p2), %v834_v5  ;;  %vm418_vm8 = vcmask (!%p243_p2), 916480   ;;  %vm476_vm10 = vcmask (!%p243_p2), 523264   ;;  %vm598_vm11 = vcmask (!%p243_p2), 7168  }
   0x9   : > { %v354_v40 = vadd.s32 (!%p243_p2), 128, %v353_v39  ;;  %v359_v43 = vand.u32 (!%p243_p2), 15, %v353_v39  ;;  %vm784_vm9 = vmpackc.low (!%p243_p2), %vm418_vm8, %vm418_vm8 }
   0xb   : > { %333 = vperm.xlu1 (!%p243_p2), %814, %v325_v3   ;;  %317 = vperm.xlu0 (!%p243_p2), %813, %v309_v4   ;;  %v366_v41 = vand.u32 (!%p243_p2), 15, %v354_v40  ;;  %vm379_vm6 = vcmp.lt.s32.totalorder (!%p243_p2), %v359_v43, 15 }
   0xc   : > { %v761_v51 = vsel (!%p243_p2), %vm379_vm6, 1.0, %v834_v5 }
   0xd   : > { %s987_s25 = smov (!%p284_p3, %s748_s25), 1  ;;  %vm380_vm4 = vcmp.lt.s32.totalorder %v366_v41, 15 }
   0xe   : > { %s903_s11 = sshll.u32 %s987_s25, 5  ;;  %v762_v44 = vsel %vm380_vm4, 1.0, %v834_v5 }
   0xf   : > { %s288_s14 = scalar_lea.vmem %s978_s0, %s903_s11  ;;  %s298_s19 = scalar_lea.vmem %s984_s6, %s903_s11 }
  0x10   : > { %v304_v6 = vld [vmem:[%s288_s14] sm:$0xff]  ;;  %v305_v7 = vld [vmem:[%s288_s14 + $0x8] sm:$0xff]  ;;  %v306_v12 = vld [vmem:[%s288_s14 + $0x10] sm:$0xff]  ;;  %s303_s22 = scalar_lea.vmem %s985_s7, %s903_s11 }
  0x11   : > { %v307_v13 = vld [vmem:[%s288_s14 + $0x18] sm:$0xff]  ;;  %s772_s14 = sshll.u32 %s987_s25, 6 }
  0x86   : > { %v329_v8 = vpop.permute.xlu1 %328  ;;  %v313_v9 = vpop.permute.xlu0 %312 }
  0x87   : > { %v320_v10 = vmul.f32 %v313_v9, %v304_v6  ;;  %v321_v11 = vmul.f32 %v313_v9, %v305_v7 }
  0x89   : > { %v336_v14 = vadd.f32 %v329_v8, %v320_v10  ;;  %v337_v15 = vadd.f32 %v329_v8, %v321_v11 }
  0x8a   : > { %v318_v16 = vpop.permute.xlu0 %317  ;;  %v334_v20 = vpop.permute.xlu1 %333 }
  0x8b   : > { %v322_v17 = vmul.f32 %v318_v16, %v306_v12  ;;  %v323_v18 = vmul.f32 %v318_v16, %v307_v13  ;;  %vm341_vm0 = vcmp.ge.f32.partialorder %v337_v15, 0.0  ;;  %v345_v19 = vmul.f32 0.01, %v337_v15 }
  0x8c   : > { %v344_v24 = vmul.f32 0.01, %v336_v14  ;;  %vm340_vm1 = vcmp.ge.f32.partialorder %v336_v14, 0.0 }
  0x8d   : > { %v338_v21 = vadd.f32 %v334_v20, %v322_v17  ;;  %v339_v22 = vadd.f32 %v334_v20, %v323_v18  ;;  %v349_v23 = vsel %vm341_vm0, %v337_v15, %v345_v19  ;;  %v448_v20 = vld [vmem:[%s979_s1] sm:$0xff] }
  0x8e   : > { %391 = vrot.lane.b32.xlu0 %v349_v23, %s835_s15  ;;  %v348_v28 = vsel %vm340_vm1, %v336_v14, %v344_v24 }
  0x8f   : > { %v346_v25 = vmul.f32 0.01, %v338_v21  ;;  %vm343_vm2 = vcmp.ge.f32.partialorder %v339_v22, 0.0  ;;  %v347_v26 = vmul.f32 0.01, %v339_v22  ;;  %vm342_vm3 = vcmp.ge.f32.partialorder %v338_v21, 0.0 }
  0x90   : > { %v815_v32 = vpack.i.bf16 %v349_v23, %v348_v28 }
  0x91   : > { %v351_v27 = vsel %vm343_vm2, %v339_v22, %v347_v26  ;;  %v350_v29 = vsel %vm342_vm3, %v338_v21, %v346_v25  ;;  %v450_v21 = vld [vmem:[%s979_s1 + $0x10] sm:$0xff]  ;;  %v449_v22 = vld [vmem:[%s979_s1 + $0x8] sm:$0xff] }
  0x92   : > { %395 = vrot.lane.b32.xlu1 %v351_v27, %s835_s15  ;;  %389 = vrot.lane.b32.xlu0 %v348_v28, %s835_s15  ;;  %v775_v30 = vpack.c.bf16 %v351_v27, %v349_v23  ;;  %v777_v31 = vpack.c.bf16 %v350_v29, %v348_v28  ;;  %v820_v33 = vpack.i.bf16 %v351_v27, %v350_v29 }
  0x94   : > { %776 = vmatprep.subr.bf16.mxu0 %v775_v30  ;;  %792 = vmatprep.subr.bf16.mxu1 %v775_v30 }
  0x95   : > { %778 = vmatpush1.bf16.msra.mxu0 %v777_v31  ;;  %796 = vmatpush1.bf16.msra.mxu1 %v777_v31 }
  0x96   : > { %393 = vrot.lane.b32.xlu1 %v350_v29, %s835_s15  ;;  %816 = vrot.lane.b32.xlu0 %v815_v32, %s836_s16 }
  0x9a   : > { %821 = vrot.lane.b32.xlu1 %v820_v33, %s836_s16  ;;  %429 = vrot.lane.b32.xlu0 %v349_v23, %s837_s17  ;;  %v451_v23 = vld [vmem:[%s979_s1 + $0x18] sm:$0xff] }
  0x9e   : > { %433 = vrot.lane.b32.xlu1 %v351_v27, %s837_s17  ;;  %427 = vrot.lane.b32.xlu0 %v348_v28, %s837_s17 }
  0xa2   : > { %431 = vrot.lane.b32.xlu1 %v350_v29, %s837_s17  ;;  %458 = vperm.xlu0 %813, %v452_v34   ;;  %s949_s17 = scalar_lea.vmem %s983_s5, %s772_s14 }
  0xa6   : > { %463 = vperm.xlu1 %814, %v453_v35   ;;  %468 = vperm.xlu0 %813, %v454_v36  }
  0xaa   : > { %473 = vperm.xlu1 %814, %v455_v37  }
 0x100   : > { %v392_v42 = vpop.permute.xlu0 %391 }
 0x101   : > { %v404_v45 = vsel %vm397_vm5, %v392_v42, 0.0 }
 0x102   : > { %v407_v49 = vmul.f32 %v762_v44, %v404_v45 }
 0x104   : > { %v396_v46 = vpop.permute.xlu1 %395  ;;  %v390_v47 = vpop.permute.xlu0 %389 }
 0x105   : > { %v405_v48 = vsel %vm397_vm5, %v396_v46, 0.0  ;;  %v398_v52 = vsel %vm397_vm5, %v390_v47, %v392_v42 }
 0x106   : > { %v409_v50 = vmul.f32 %v762_v44, %v405_v48  ;;  %v406_v57 = vmul.f32 %v761_v51, %v398_v52 }
 0x108   : > { %v394_v53 = vpop.permute.xlu1 %393  ;;  %v817_v54 = vpop.permute.xlu0 %816  ;;  %v779_v55 = vpack.c.bf16 %v409_v50, %v407_v49 }
 0x109   : > { %v399_v56 = vsel %vm397_vm5, %v394_v53, %v396_v46  ;;  %v819_v59 = vunpack.i.h.bf16 %v817_v54  ;;  %v818_v60 = vunpack.i.l.bf16 %v817_v54 }
 0x10a   : > { %v408_v58 = vmul.f32 %v761_v51, %v399_v56  ;;  %780 = vmatprep.subr.bf16.mxu0 %v779_v55  ;;  %793 = vmatprep.subr.bf16.mxu1 %v779_v55 }
 0x10b   : > { %v419_v4 = vsel %vm418_vm8, %v818_v60, %v819_v59 }
 0x10c   : > { %v822_v61 = vpop.permute.xlu1 %821  ;;  %v430_v62 = vpop.permute.xlu0 %429  ;;  %v781_v63 = vpack.c.bf16 %v408_v58, %v406_v57 }
 0x10d   : > { %v824_v0 = vunpack.i.h.bf16 %v822_v61  ;;  %v823_v1 = vunpack.i.l.bf16 %v822_v61  ;;  %v442_v3 = vsel %vm435_vm7, %v430_v62, 0.0 }
 0x10e   : > { %782 = vmatpush1.bf16.msra.mxu0 %v781_v63  ;;  %797 = vmatpush1.bf16.msra.mxu1 %v781_v63  ;;  %v445_v11 = vmul.f32 %v762_v44, %v442_v3 }
 0x10f   : > { %v783_v2 = vpack.c.bf16 %v824_v0, %v819_v59  ;;  %v420_v6 = vsel %vm418_vm8, %v823_v1, %v824_v0 }
 0x110   : > { %v434_v7 = vpop.permute.xlu1 %433  ;;  %v428_v8 = vpop.permute.xlu0 %427  ;;  %v786_v9 = vpack.c.bf16 %v420_v6, %v419_v4 }
 0x111   : > { %v443_v10 = vsel %vm435_vm7, %v434_v7, 0.0  ;;  %785 = vmatprep.subr.msk.bf16.mxu0 %vm784_vm9, %v783_v2  ;;  %794 = vmatprep.subr.msk.bf16.mxu1 %vm784_vm9, %v783_v2  ;;  %v436_v13 = vsel %vm435_vm7, %v428_v8, %v430_v62 }
 0x112   : > { %v447_v12 = vmul.f32 %v762_v44, %v443_v10  ;;  %787 = vmatpush1.bf16.msra.mxu0 %v786_v9  ;;  %798 = vmatpush1.bf16.msra.mxu1 %v786_v9  ;;  %v444_v17 = vmul.f32 %v761_v51, %v436_v13 }
 0x114   : > { %v432_v14 = vpop.permute.xlu1 %431  ;;  %v788_v15 = vpack.c.bf16 %v447_v12, %v445_v11 }
 0x115   : > { %v437_v16 = vsel %vm435_vm7, %v432_v14, %v434_v7 }
 0x116   : > { %v446_v18 = vmul.f32 %v761_v51, %v437_v16  ;;  %789 = vmatprep.subr.bf16.mxu0 %v788_v15  ;;  %795 = vmatprep.subr.bf16.mxu1 %v788_v15 }
 0x118   : > { %v790_v19 = vpack.c.bf16 %v446_v18, %v444_v17 }
 0x11a   : > { %791 = vmatpush1.bf16.msra.mxu0 %v790_v19  ;;  %799 = vmatpush1.bf16.msra.mxu1 %v790_v19 }
 0x11d   : > { %765 = vmatmul.mubr.msk.f32.vlgmr.msra.gmra.mrb[0].mxu0 %vm476_vm10, %v448_v20  ;;  %767 = vmatmul.mubr.msk.f32.vlgmr.msra.gmra.mrb[0].mxu1 %vm476_vm10, %v450_v21 }
 0x11e   : > { %559 = vmatprep.mubr.f32.mxu0 %v834_v5  ;;  %571 = vmatprep.mubr.f32.mxu1 %v834_v5 }
 0x121   : > { %766 = vmatmul.mubr.msk.f32.gmra.mrb[2].mxu0 %vm476_vm10, %v449_v22  ;;  %768 = vmatmul.mubr.msk.f32.gmra.mrb[2].mxu1 %vm476_vm10, %v451_v23  ;;  %v459_v24 = vpop.permute.xlu0 %458 }
 0x125   : > { %v464_v25 = vpop.permute.xlu1 %463  ;;  %v469_v26 = vpop.permute.xlu0 %468 }
 0x129   : > { %v474_v34 = vpop.permute.xlu1 %473 }
 0x1f0   : > { %v555_v5 = vpop.f32.mrb[0].mxu0  ;;  %v567_v27 = vpop.f32.mrb[0].mxu1 }
 0x1f1   : > { %v556_v28 = vadd.f32 %v555_v5, %v459_v24  ;;  %v568_v29 = vadd.f32 %v567_v27, %v469_v26  ;;  %v557_v30 = vpop.f32.mrb[1].mxu0  ;;  %v569_v31 = vpop.f32.mrb[1].mxu1 }
 0x1f2   : > { %v558_v32 = vadd.f32 %v557_v30, %v459_v24  ;;  %v570_v33 = vadd.f32 %v569_v31, %v469_v26 }
 0x1f3   : > { %578 = vst [vmem:[%s949_s17] sm:$0xff] %v556_v28  ;;  %582 = vst [vmem:[%s949_s17 + $0x20] sm:$0xff] %v568_v29  ;;  %v603_v35 = vmul.f32 %v556_v28, %v556_v28  ;;  %v607_v36 = vmul.f32 %v568_v29, %v568_v29 }
 0x1f4   : > { %579 = vst [vmem:[%s949_s17 + $0x8] sm:$0xff] %v558_v32  ;;  %583 = vst [vmem:[%s949_s17 + $0x28] sm:$0xff] %v570_v33  ;;  %v561_v37 = vpop.f32.mrb[2].mxu0  ;;  %v573_v38 = vpop.f32.mrb[2].mxu1  ;;  %v586_v39 = vadd.f32 %v558_v32, %v556_v28  ;;  %v604_v40 = vmul.f32 %v558_v32, %v558_v32  ;;  %v592_v41 = vadd.f32 %v570_v33, %v568_v29 }
 0x1f5   : > { %v608_v42 = vmul.f32 %v570_v33, %v570_v33  ;;  %v562_v43 = vadd.f32 %v561_v37, %v464_v25  ;;  %v574_v44 = vadd.f32 %v573_v38, %v474_v34  ;;  %v563_v45 = vpop.f32.mrb[3].mxu0  ;;  %v575_v46 = vpop.f32.mrb[3].mxu1 }
 0x1f6   : > { %v564_v47 = vadd.f32 %v563_v45, %v464_v25  ;;  %v576_v48 = vadd.f32 %v575_v46, %v474_v34  ;;  %587 = vadd.xlane.f32.xlu0 %v586_v39  ;;  %v611_v49 = vadd.f32 %v604_v40, %v603_v35 }
 0x1f7   : > { %v617_v50 = vadd.f32 %v608_v42, %v607_v36  ;;  %580 = vst [vmem:[%s949_s17 + $0x10] sm:$0xff] %v562_v43  ;;  %584 = vst [vmem:[%s949_s17 + $0x30] sm:$0xff] %v574_v44  ;;  %v605_v51 = vmul.f32 %v562_v43, %v562_v43  ;;  %v609_v52 = vmul.f32 %v574_v44, %v574_v44 }
 0x1f8   : > { %581 = vst [vmem:[%s949_s17 + $0x18] sm:$0xff] %v564_v47  ;;  %585 = vst [vmem:[%s949_s17 + $0x38] sm:$0xff] %v576_v48  ;;  %612 = vadd.xlane.f32.xlu1 %v611_v49  ;;  %v589_v53 = vadd.f32 %v564_v47, %v562_v43  ;;  %v595_v54 = vadd.f32 %v576_v48, %v574_v44  ;;  %v606_v55 = vmul.f32 %v564_v47, %v564_v47 }
 0x1f9   : > { %v610_v56 = vmul.f32 %v576_v48, %v576_v48 }
 0x1fa   : > { %593 = vadd.xlane.f32.xlu0 %v592_v41  ;;  %v614_v57 = vadd.f32 %v606_v55, %v605_v51 }
 0x1fb   : > { %v620_v58 = vadd.f32 %v610_v56, %v609_v52 }
 0x1fc   : > { %590 = vadd.xlane.f32.xlu1 %v589_v53 }
 0x1fe   : > { %596 = vadd.xlane.f32.xlu0 %v595_v54 }
 0x200   : > { %618 = vadd.xlane.f32.xlu1 %v617_v50 }
 0x202   : > { %615 = vadd.xlane.f32.xlu0 %v614_v57 }
 0x206   : > { %621 = vadd.xlane.f32.xlu0 %v620_v58 }
 0x283   : > { %v588_v59 = vpop.xlane.xlu0 %587 }
 0x284   : > { %599 = vst.msk [vmem:[%s298_s19] sm:$0xff] %vm598_vm11, %v588_v59 }
 0x285   : > { %v613_v60 = vpop.xlane.xlu1 %612 }
 0x286   : > { %623 = vst.msk [vmem:[%s303_s22] sm:$0xff] %vm598_vm11, %v613_v60 }
 0x287   : > { %v594_v61 = vpop.xlane.xlu0 %593 }
 0x288   : > { %601 = vst.msk [vmem:[%s298_s19 + $0x10] sm:$0xff] %vm598_vm11, %v594_v61 }
 0x289   : > { %v591_v62 = vpop.xlane.xlu1 %590 }
 0x28a   : > { %600 = vst.msk [vmem:[%s298_s19 + $0x8] sm:$0xff] %vm598_vm11, %v591_v62 }
 0x28b   : > { %v597_v63 = vpop.xlane.xlu0 %596 }
 0x28c   : > { %602 = vst.msk [vmem:[%s298_s19 + $0x18] sm:$0xff] %vm598_vm11, %v597_v63 }
 0x28d   : > { %v619_v0 = vpop.xlane.xlu1 %618 }
 0x28e   : > { %625 = vst.msk [vmem:[%s303_s22 + $0x10] sm:$0xff] %vm598_vm11, %v619_v0 }
 0x28f   : > { %v616_v1 = vpop.xlane.xlu0 %615 }
 0x290   : > { %624 = vst.msk [vmem:[%s303_s22 + $0x8] sm:$0xff] %vm598_vm11, %v616_v1 }
 0x293   : > { %v622_v2 = vpop.xlane.xlu0 %621 }
 0x294   : > { %626 = vst.msk [vmem:[%s303_s22 + $0x18] sm:$0xff] %vm598_vm11, %v622_v2 }
 0x295 PF: > { %s18_s24 = sadd.s32 1, %s831_s24  }
 0x296   : > { %p15_p4 = scmp.ge.s32.totalorder %s18_s24, 4  }
 0x298   :  { %17 = sbr.rel (!%p15_p4) target bundleno = 1 (0x1), region = 94 }

// kernel: decoder_forward.7
= control target key start
LH: loop header
LB: loop body
LE: loop exit
PB: predicated region body
PF: predicated region fallthrough
CT: control target
= control target key end

     0   :  { %s1311_s24 = smov 0   ;;  %s1547_s0 = inlined_call_operand.vmem [shape: f32[2,8,1024], index: 0, kind: input, shape index: {}]   ;;  %s1548_s1 = inlined_call_operand.vmem [shape: f32[12,32], index: 1, kind: input, shape index: {}]   ;;  %s1549_s2 = inlined_call_operand.vmem [shape: f32[12,1], index: 2, kind: input, shape index: {}]   ;;  %s1550_s3 = inlined_call_operand.vmem [shape: f32[8,1], index: 3, kind: input, shape index: {}]   ;;  %s1551_s4 = inlined_call_operand.vmem [shape: f32[8,1], index: 4, kind: input, shape index: {}]   ;;  %s1552_s5 = inlined_call_operand.vmem [shape: f32[2,12,1024], index: 5, kind: output, shape index: {0}]   ;;  %s1553_s6 = inlined_call_operand.vmem [shape: f32[2,12,1], index: 6, kind: output, shape index: {1}]   ;;  %s1554_s7 = inlined_call_operand.vmem [shape: f32[2,12,1], index: 7, kind: output, shape index: {2}]  }
   0x1 LB: > { %s1157_s25 = sadd.s32 4294967295, %s1263_s24   ;;  %p1161_p0 = scmp.ge.s32.totalorder %s1263_s24, 1  ;;  %s1263_s24 = sphi %s1311_s24, %s18_s24  }
   0x2   : > { %p242_p1 = scmp.lt.s32.totalorder %s1263_s24, 3 }
   0x4   : > { %p243_p2 = pnand %p1161_p0, %p242_p1 }
   0x5   : > { %v312_v0 = vld [vmem:[%s1550_s3] sm:$0xff] (!%p243_p2)  ;;  %v1265_v1 = vmov (!%p243_p2), 0   ;;  %p284_p3 = scmp.lt.s32.totalorder (!%p243_p2), %s1157_s25, 1  ;;  %v1266_v3 = vmov (!%p243_p2), 0.0   ;;  %s1267_s11 = smov (!%p243_p2), 127   ;;  %v364_v51 = vlaneseq (!%p243_p2)  ;;  %vm517_vm9 = vcmask (!%p243_p2), 1039360  }
   0x6   : > { %246 = sbr.rel (%p243_p2) target bundleno = 678 (0x2a6), region = 40  ;;  %1240 = vset.pattern.permute.xlu0 (!%p243_p2), %v1265_v1  ;;  %1256 = vset.pattern.permute.xlu1 (!%p243_p2), %v1265_v1  ;;  %v326_v2 = vld [vmem:[%s1551_s4] sm:$0xff] (!%p243_p2)  ;;  %s1268_s12 = smov (!%p243_p2), 95   ;;  %v619_v50 = vld [vmem:[%s1549_s2 + $0x8] sm:$0xf] (!%p243_p2)  ;;  %vm591_vm13 = vcmask (!%p243_p2), 777216  }
   0x7   : > { %315 = vperm.xlu0 (!%p243_p2), %1240, %v312_v0   ;;  %701 = vmatprep.mubr.f32.mxu0 (!%p243_p2), %v1266_v3  ;;  %s1269_s13 = smov (!%p243_p2), 96   ;;  %v618_v49 = vld [vmem:[%s1549_s2] sm:$0xff] (!%p243_p2)  ;;  %v365_v52 = vand.u32 (!%p243_p2), 127, %v364_v51  ;;  %vm558_vm14 = vcmask (!%p243_p2), 785408  }
   0x8   : > { %778 = vmatprep.mubr.f32.mxu1 (!%p243_p2), %v1266_v3 }
   0x9   : > { %v366_v53 = vadd.s32 (!%p243_p2), 128, %v365_v52  ;;  %v377_v54 = vand.u32 (!%p243_p2), 31, %v365_v52  ;;  %v367_v55 = vadd.s32 (!%p243_p2), 256, %v365_v52  ;;  %v368_v57 = vadd.s32 (!%p243_p2), 384, %v365_v52 }
   0xb   : > { %329 = vperm.xlu0 (!%p243_p2), %1240, %v326_v2   ;;  %v384_v56 = vand.u32 (!%p243_p2), 31, %v366_v53  ;;  %vm469_vm8 = vcmp.lt.s32.totalorder (!%p243_p2), %v377_v54, 31  ;;  %v391_v60 = vand.u32 (!%p243_p2), 31, %v367_v55  ;;  %v398_v61 = vand.u32 (!%p243_p2), 31, %v368_v57 }
   0xc   : > { %v1170_v62 = vsel (!%p243_p2), %vm469_vm8, 1.0, %v1266_v3  ;;  %vm990_vm8 = vcmask (!%p243_p2), 3072  }
   0xd   : > { %s1556_s25 = smov (!%p284_p3, %s1157_s25), 1  ;;  %vm470_vm10 = vcmp.lt.s32.totalorder %v384_v56, 31  ;;  %vm471_vm11 = vcmp.lt.s32.totalorder %v391_v60, 31  ;;  %vm472_vm12 = vcmp.lt.s32.totalorder %v398_v61, 31 }
   0xe   : > { %s1189_s30 = sshll.u32 %s1556_s25, 6  ;;  %v1171_v0 = vsel %vm470_vm10, 1.0, %v1266_v3  ;;  %s1190_s22 = sshll.u32 %s1556_s25, 7 }
   0xf   : > { %s1331_s10 = scalar_lea.vmem %s1547_s0, %s1189_s30  ;;  %s1483_s27 = scalar_lea.vmem %s1552_s5, %s1190_s22 }
  0x10   : > { %v305_v4 = vld [vmem:[%s1331_s10 + $0x8] sm:$0xff]  ;;  %v304_v6 = vld [vmem:[%s1331_s10] sm:$0xff]  ;;  %v306_v7 = vld [vmem:[%s1331_s10 + $0x10] sm:$0xff]  ;;  %s1191_s28 = sshll.u32 %s1556_s25, 4 }
  0x11   : > { %v308_v8 = vld [vmem:[%s1331_s10 + $0x20] sm:$0xff]  ;;  %v307_v13 = vld [vmem:[%s1331_s10 + $0x18] sm:$0xff]  ;;  %v309_v27 = vld [vmem:[%s1331_s10 + $0x28] sm:$0xff]  ;;  %s298_s8 = scalar_lea.vmem %s1553_s6, %s1191_s28 }
  0x12   : > { %v310_v35 = vld [vmem:[%s1331_s10 + $0x30] sm:$0xff]  ;;  %v311_v41 = vld [vmem:[%s1331_s10 + $0x38] sm:$0xff] }
  0x86   : > { %v316_v5 = vpop.permute.xlu0 %315 }
  0x87   : > { %v319_v9 = vmul.f32 %v316_v5, %v305_v4  ;;  %v318_v10 = vmul.f32 %v316_v5, %v304_v6  ;;  %v320_v11 = vmul.f32 %v316_v5, %v306_v7  ;;  %v322_v12 = vmul.f32 %v316_v5, %v308_v8 }
  0x88   : > { %v321_v19 = vmul.f32 %v316_v5, %v307_v13  ;;  %v323_v31 = vmul.f32 %v316_v5, %v309_v27  ;;  %v324_v37 = vmul.f32 %v316_v5, %v310_v35  ;;  %v325_v43 = vmul.f32 %v316_v5, %v311_v41 }
  0x89   : > { %v1410_v7 = vsel %vm471_vm11, 1.0, %v1266_v3  ;;  %v1413_v8 = vsel %vm472_vm12, 1.0, %v1266_v3 }
  0x8a   : > { %v330_v14 = vpop.permute.xlu0 %329 }
  0x8b   : > { %v333_v15 = vadd.f32 %v330_v14, %v319_v9  ;;  %v332_v16 = vadd.f32 %v330_v14, %v318_v10  ;;  %v334_v17 = vadd.f32 %v330_v14, %v320_v11  ;;  %v336_v18 = vadd.f32 %v330_v14, %v322_v12 }
  0x8c   : > { %v335_v22 = vadd.f32 %v330_v14, %v321_v19  ;;  %v337_v33 = vadd.f32 %v330_v14, %v323_v31  ;;  %v338_v39 = vadd.f32 %v330_v14, %v324_v37  ;;  %v339_v45 = vadd.f32 %v330_v14, %v325_v43 }
  0x8d   : > { %vm341_vm0 = vcmp.ge.f32.partialorder %v333_v15, 0.0  ;;  %v349_v20 = vmul.f32 0.01, %v333_v15  ;;  %vm340_vm1 = vcmp.ge.f32.partialorder %v332_v16, 0.0  ;;  %v348_v21 = vmul.f32 0.01, %v332_v16 }
  0x8e   : > { %v350_v25 = vmul.f32 0.01, %v334_v17  ;;  %v352_v26 = vmul.f32 0.01, %v336_v18  ;;  %vm342_vm2 = vcmp.ge.f32.partialorder %v334_v17, 0.0  ;;  %vm344_vm3 = vcmp.ge.f32.partialorder %v336_v18, 0.0 }
  0x8f   : > { %v1340_v23 = vsel %vm341_vm0, %v333_v15, %v349_v20  ;;  %v1342_v24 = vsel %vm340_vm1, %v332_v16, %v348_v21  ;;  %v351_v30 = vmul.f32 0.01, %v335_v22  ;;  %vm343_vm4 = vcmp.ge.f32.partialorder %v335_v22, 0.0 }
  0x90   : > { %503 = vrot.lane.b32.xlu1 %v1340_v23, %s1267_s11  ;;  %501 = vrot.lane.b32.xlu0 %v1342_v24, %s1267_s11  ;;  %v1349_v28 = vsel %vm342_vm2, %v334_v17, %v350_v25  ;;  %v1351_v29 = vsel %vm344_vm3, %v336_v18, %v352_v26  ;;  %v353_v36 = vmul.f32 0.01, %v337_v33  ;;  %vm345_vm5 = vcmp.ge.f32.partialorder %v337_v33, 0.0 }
  0x91   : > { %v1357_v32 = vsel %vm343_vm4, %v335_v22, %v351_v30  ;;  %v1241_v34 = vpack.i.bf16 %v1349_v28, %v1340_v23  ;;  %v354_v42 = vmul.f32 0.01, %v338_v39  ;;  %vm346_vm6 = vcmp.ge.f32.partialorder %v338_v39, 0.0 }
  0x92   : > { %v1368_v38 = vsel %vm345_vm5, %v337_v33, %v353_v36  ;;  %v1246_v40 = vpack.i.bf16 %v1357_v32, %v1342_v24  ;;  %v355_v46 = vmul.f32 0.01, %v339_v45  ;;  %vm347_vm7 = vcmp.ge.f32.partialorder %v339_v45, 0.0 }
  0x93   : > { %v1379_v44 = vsel %vm346_vm6, %v338_v39, %v354_v42  ;;  %v369_v17 = vadd.s32 512, %v365_v52  ;;  %v370_v22 = vadd.s32 640, %v365_v52  ;;  %v371_v37 = vadd.s32 768, %v365_v52 }
  0x94   : > { %505 = vrot.lane.b32.xlu1 %v1349_v28, %s1267_s11  ;;  %509 = vrot.lane.b32.xlu0 %v1351_v29, %s1267_s11  ;;  %v1251_v47 = vpack.i.bf16 %v1379_v44, %v1368_v38  ;;  %v1390_v48 = vsel %vm347_vm7, %v339_v45, %v355_v46  ;;  %v372_v39 = vadd.s32 896, %v365_v52  ;;  %vm630_vm1 = vcmask 261120  }
  0x95   : > { %v405_v27 = vand.u32 31, %v369_v17  ;;  %v412_v35 = vand.u32 31, %v370_v22  ;;  %v419_v51 = vand.u32 31, %v371_v37  ;;  %vm1270_vm4 = vmmov 1  }
  0x96   : > { %v426_v53 = vand.u32 31, %v372_v39  ;;  %vm1222_vm5 = vmpackc.low %vm1270_vm4, %vm558_vm14  ;;  %vm970_vm6 = vcmask 1043456   ;;  %vm988_vm7 = vcmask 7168  }
  0x97   : > { %vm473_vm15 = vcmp.lt.s32.totalorder %v405_v27, 31  ;;  %vm474_vm0 = vcmp.lt.s32.totalorder %v412_v35, 31  ;;  %vm475_vm2 = vcmp.lt.s32.totalorder %v419_v51, 31 }
  0x98   : > { %507 = vrot.lane.b32.xlu1 %v1357_v32, %s1267_s11  ;;  %579 = vrot.lane.b32.xlu0 %v1349_v28, %s1268_s12  ;;  %v1174_v42 = vsel %vm473_vm15, 1.0, %v1266_v3  ;;  %v1175_v45 = vsel %vm474_vm0, 1.0, %v1266_v3  ;;  %vm476_vm3 = vcmp.lt.s32.totalorder %v426_v53, 31 }
  0x9c   : > { %577 = vrot.lane.b32.xlu1 %v1340_v23, %s1268_s12  ;;  %1242 = vrot.lane.b32.xlu0 %v1241_v34, %s1269_s13 }
  0xa0   : > { %575 = vrot.lane.b32.xlu1 %v1342_v24, %s1268_s12  ;;  %511 = vrot.lane.b32.xlu0 %v1368_v38, %s1267_s11 }
  0xa4   : > { %1247 = vrot.lane.b32.xlu1 %v1246_v40, %s1269_s13  ;;  %581 = vrot.lane.b32.xlu0 %v1357_v32, %s1268_s12 }
  0xa8   : > { %513 = vrot.lane.b32.xlu1 %v1379_v44, %s1267_s11  ;;  %550 = vrot.lane.b32.xlu0 %v1351_v29, %s1269_s13 }
  0xac   : > { %583 = vrot.lane.b32.xlu1 %v1351_v29, %s1268_s12  ;;  %585 = vrot.lane.b32.xlu0 %v1368_v38, %s1268_s12 }
  0xb0   : > { %515 = vrot.lane.b32.xlu1 %v1390_v48, %s1267_s11  ;;  %1252 = vrot.lane.b32.xlu0 %v1251_v47, %s1269_s13  ;;  %s303_s11 = scalar_lea.vmem %s1554_s7, %s1191_s28 }
  0xb4   : > { %587 = vrot.lane.b32.xlu1 %v1379_v44, %s1268_s12  ;;  %556 = vrot.lane.b32.xlu0 %v1390_v48, %s1269_s13 }
  0xb8   : > { %589 = vrot.lane.b32.xlu1 %v1390_v48, %s1268_s12  ;;  %622 = vperm.xlu0 %1240, %v618_v49  }
  0xbc   : > { %627 = vperm.xlu1 %1256, %v619_v50  }
 0x102   : > { %v504_v58 = vpop.permute.xlu1 %503  ;;  %v502_v59 = vpop.permute.xlu0 %501 }
 0x103   : > { %v518_v63 = vsel %vm517_vm9, %v502_v59, %v504_v58 }
 0x104   : > { %v534_v4 = vmul.f32 %v1170_v62, %v518_v63 }
 0x106   : > { %v506_v1 = vpop.permute.xlu1 %505  ;;  %v510_v2 = vpop.permute.xlu0 %509  ;;  %v1195_v14 = vpack.c.bf16 %v534_v4, %v1342_v24  ;;  %v1176_v4 = vsel %vm475_vm2, 1.0, %v1266_v3 }
 0x107   : > { %v519_v5 = vsel %vm517_vm9, %v504_v58, %v506_v1  ;;  %v1435_v58 = vld [vmem:[%s1548_s1] sm:$0xff] }
 0x108   : > { %v535_v6 = vmul.f32 %v1171_v0, %v519_v5  ;;  %v1177_v5 = vsel %vm476_vm3, 1.0, %v1266_v3 }
 0x10a   : > { %v508_v9 = vpop.permute.xlu1 %507  ;;  %v580_v10 = vpop.permute.xlu0 %579  ;;  %v1193_v11 = vpack.c.bf16 %v535_v6, %v1340_v23 }
 0x10b   : > { %v520_v12 = vsel %vm517_vm9, %v506_v1, %v508_v9  ;;  %v521_v13 = vsel %vm517_vm9, %v508_v9, %v510_v2 }
 0x10c   : > { %v536_v15 = vmul.f32 %v1410_v7, %v520_v12  ;;  %1194 = vmatprep.subr.bf16.mxu0 %v1193_v11  ;;  %v537_v16 = vmul.f32 %v1413_v8, %v521_v13 }
 0x10d   : > { %1196 = vmatpush1.bf16.msra.mxu0 %v1195_v14 }
 0x10e   : > { %v578_v18 = vpop.permute.xlu1 %577  ;;  %v1243_v19 = vpop.permute.xlu0 %1242  ;;  %v1201_v20 = vpack.c.bf16 %v537_v16, %v1357_v32  ;;  %v1203_v21 = vpack.c.bf16 %v536_v15, %v1349_v28 }
 0x10f   : > { %v593_v23 = vsel %vm591_vm13, %v578_v18, %v580_v10  ;;  %v1245_v25 = vunpack.i.h.bf16 %v1243_v19  ;;  %v1244_v24 = vunpack.i.l.bf16 %v1243_v19 }
 0x110   : > { %v609_v26 = vmul.f32 %v1171_v0, %v593_v23  ;;  %1202 = vmatprep.subr.bf16.mxu1 %v1201_v20 }
 0x111   : > { %1204 = vmatpush1.bf16.msra.mxu1 %v1203_v21  ;;  %v560_v30 = vsel %vm558_vm14, %v1244_v24, %v1245_v25 }
 0x112   : > { %v576_v31 = vpop.permute.xlu1 %575  ;;  %v512_v33 = vpop.permute.xlu0 %511  ;;  %v1197_v34 = vpack.c.bf16 %v609_v26, %v560_v30 }
 0x113   : > { %v592_v32 = vsel %vm591_vm13, %v576_v31, %v578_v18  ;;  %v522_v43 = vsel %vm517_vm9, %v510_v2, %v512_v33 }
 0x114   : > { %1198 = vmatprep.subr.bf16.mxu0 %v1197_v34  ;;  %v608_v41 = vmul.f32 %v1170_v62, %v592_v32  ;;  %v538_v54 = vmul.f32 %v1174_v42, %v522_v43 }
 0x116   : > { %v1248_v28 = vpop.permute.xlu1 %1247  ;;  %v582_v36 = vpop.permute.xlu0 %581  ;;  %v1211_v62 = vpack.c.bf16 %v538_v54, %v1351_v29 }
 0x117   : > { %v1249_v40 = vunpack.i.l.bf16 %v1248_v28  ;;  %v1250_v56 = vunpack.i.h.bf16 %v1248_v28  ;;  %v594_v52 = vsel %vm591_vm13, %v580_v10, %v582_v36 }
 0x118   : > { %v610_v63 = vmul.f32 %v1410_v7, %v594_v52 }
 0x119   : > { %v559_v46 = vsel %vm558_vm14, %v1249_v40, %v1244_v24  ;;  %v561_v2 = vsel %vm558_vm14, %v1245_v25, %v1250_v56 }
 0x11a   : > { %v514_v47 = vpop.permute.xlu1 %513  ;;  %v551_v49 = vpop.permute.xlu0 %550  ;;  %v1199_v50 = vpack.c.bf16 %v608_v41, %v559_v46  ;;  %v1207_v11 = vpack.c.bf16 %v610_v63, %v561_v2 }
 0x11b   : > { %v523_v55 = vsel %vm517_vm9, %v512_v33, %v514_v47  ;;  %v562_v29 = vsel %vm558_vm14, %v1250_v56, %v551_v49 }
 0x11c   : > { %v539_v57 = vmul.f32 %v1175_v45, %v523_v55  ;;  %1200 = vmatpush1.bf16.msra.mxu0 %v1199_v50 }
 0x11e   : > { %v584_v59 = vpop.permute.xlu1 %583  ;;  %v586_v60 = vpop.permute.xlu0 %585  ;;  %v1209_v61 = vpack.c.bf16 %v539_v57, %v1368_v38  ;;  %v617_v38 = vld [vmem:[%s1548_s1 + $0x8] sm:$0xf] }
 0x11f   : > { %v595_v0 = vsel %vm591_vm13, %v582_v36, %v584_v59  ;;  %1178 = vmatmul.mubr.msk.f32.vlgmr.msra.gmra.mrb[0].mxu0 %vm630_vm1, %v1435_v58  ;;  %v596_v16 = vsel %vm591_vm13, %v584_v59, %v586_v60 }
 0x120   : > { %v611_v1 = vmul.f32 %v1413_v8, %v595_v0  ;;  %1210 = vmatprep.subr.bf16.mxu0 %v1209_v61  ;;  %707 = vmatprep.mubr.f32.mxu0 %v1266_v3  ;;  %v612_v23 = vmul.f32 %v1174_v42, %v596_v16 }
 0x121   : > { %1212 = vmatpush1.bf16.msra.mxu0 %v1211_v62 }
 0x122   : > { %v516_v6 = vpop.permute.xlu1 %515  ;;  %v1253_v7 = vpop.permute.xlu0 %1252  ;;  %v1205_v9 = vpack.c.bf16 %v611_v1, %v562_v29 }
 0x123   : > { %v524_v8 = vsel %vm517_vm9, %v514_v47, %v516_v6  ;;  %v533_v10 = vsel %vm517_vm9, %v516_v6, 0.0  ;;  %1179 = vmatmul.mubr.msk.f32.gmra.mrb[2].mxu0 %vm630_vm1, %v617_v38  ;;  %v1254_v14 = vunpack.i.l.bf16 %v1253_v7  ;;  %v1255_v15 = vunpack.i.h.bf16 %v1253_v7 }
 0x124   : > { %v540_v12 = vmul.f32 %v1176_v4, %v524_v8  ;;  %v541_v13 = vmul.f32 %v1177_v5, %v533_v10  ;;  %1206 = vmatprep.subr.bf16.mxu1 %v1205_v9  ;;  %855 = vmatprep.mubr.f32.mxu0 %v1266_v3 }
 0x125   : > { %1208 = vmatpush1.bf16.msra.mxu1 %v1207_v11  ;;  %v563_v21 = vsel %vm558_vm14, %v551_v49, %v1254_v14  ;;  %v564_v25 = vsel %vm558_vm14, %v1254_v14, %v1255_v15 }
 0x126   : > { %v1219_v17 = vpack.c.bf16 %v540_v12, %v1379_v44  ;;  %v588_v18 = vpop.permute.xlu1 %587  ;;  %v1217_v19 = vpack.c.bf16 %v541_v13, %v1390_v48  ;;  %v557_v24 = vpop.permute.xlu0 %556  ;;  %v1215_v27 = vpack.c.bf16 %v612_v23, %v563_v21 }
 0x127   : > { %v597_v20 = vsel %vm591_vm13, %v586_v60, %v588_v18  ;;  %v565_v34 = vsel %vm558_vm14, %v1255_v15, %v557_v24 }
 0x128   : > { %v613_v22 = vmul.f32 %v1175_v45, %v597_v20  ;;  %1180 = vmatmul.mubr.msk.f32.vlgmr.msra.gmra.mrb[0].mxu1 %vm630_vm1, %v1435_v58  ;;  %1218 = vmatprep.subr.bf16.mxu1 %v1217_v19 }
 0x129   : > { %1220 = vmatpush1.bf16.msra.mxu1 %v1219_v17  ;;  %784 = vmatprep.mubr.f32.mxu1 %v1266_v3 }
 0x12a   : > { %v590_v44 = vpop.permute.xlu1 %589  ;;  %v1213_v26 = vpack.c.bf16 %v613_v22, %v564_v25 }
 0x12b   : > { %v598_v48 = vsel %vm591_vm13, %v588_v18, %v590_v44  ;;  %v607_v30 = vsel %vm591_vm13, %v590_v44, 0.0 }
 0x12c   : > { %v614_v31 = vmul.f32 %v1176_v4, %v598_v48  ;;  %v615_v33 = vmul.f32 %v1177_v5, %v607_v30  ;;  %1214 = vmatprep.subr.bf16.mxu0 %v1213_v26  ;;  %1181 = vmatmul.mubr.msk.f32.gmra.mrb[2].mxu1 %vm630_vm1, %v617_v38 }
 0x12d   : > { %1216 = vmatpush1.bf16.msra.mxu0 %v1215_v27  ;;  %932 = vmatprep.mubr.f32.mxu1 %v1266_v3 }
 0x12e   : > { %v1221_v35 = vpack.c.bf16 %v615_v33, %v557_v24  ;;  %v1224_v32 = vpack.c.bf16 %v614_v31, %v565_v34 }
 0x130   : > { %1182 = vmatmul.mubr.msk.f32.vlgmr.msra.gmra.mrb[4].mxu0 %vm630_vm1, %v1435_v58  ;;  %1223 = vmatprep.subr.msk.bf16.mxu1 %vm1222_vm5, %v1221_v35 }
 0x131   : > { %1225 = vmatpush1.bf16.msra.mxu1 %v1224_v32  ;;  %861 = vmatprep.mubr.f32.mxu0 %v1266_v3 }
 0x134   : > { %1183 = vmatmul.mubr.msk.f32.gmra.mrb[6].mxu0 %vm630_vm1, %v617_v38  ;;  %1185 = vmatmul.mubr.msk.f32.vlgmr.msra.gmra.mrb[4].mxu1 %vm630_vm1, %v1435_v58 }
 0x135   : > { %938 = vmatprep.mubr.f32.mxu1 %v1266_v3 }
 0x137   : > { %v1485_v28 = vpop.permute.xlu0 %622 }
 0x138   : > { %1186 = vmatmul.mubr.msk.f32.gmra.mrb[6].mxu1 %vm630_vm1, %v617_v38 }
 0x13b   : > { %v1489_v3 = vpop.permute.xlu1 %627 }
 0x1f2   : > { %v703_v36 = vpop.f32.mrb[0].mxu0 }
 0x1f3   : > { %v704_v37 = vadd.f32 %v703_v36, %v1485_v28  ;;  %v705_v39 = vpop.f32.mrb[1].mxu0 }
 0x1f4   : > { %v706_v40 = vadd.f32 %v705_v39, %v1485_v28 }
 0x1f5   : > { %945 = vst [vmem:[%s1483_s27] sm:$0xff] %v704_v37  ;;  %v992_v41 = vmul.f32 %v704_v37, %v704_v37 }
 0x1f6   : > { %946 = vst [vmem:[%s1483_s27 + $0x8] sm:$0xff] %v706_v40  ;;  %v961_v42 = vadd.f32 %v706_v40, %v704_v37  ;;  %v993_v43 = vmul.f32 %v706_v40, %v706_v40  ;;  %v709_v45 = vpop.f32.mrb[2].mxu0 }
 0x1f7   : > { %v710_v46 = vadd.f32 %v709_v45, %v1489_v3  ;;  %v711_v47 = vpop.f32.mrb[3].mxu0 }
 0x1f8   : > { %v1008_v49 = vadd.f32 %v993_v43, %v992_v41  ;;  %v712_v50 = vadd.f32 %v711_v47, %v1489_v3 }
 0x1f9   : > { %953 = vst [vmem:[%s1483_s27 + $0x40] sm:$0xf] %v710_v46  ;;  %v971_v51 = vsel %vm970_vm6, %v710_v46, 0.0  ;;  %v1000_v53 = vmul.f32 %v710_v46, %v710_v46 }
 0x1fa   : > { %954 = vst [vmem:[%s1483_s27 + $0x48] sm:$0xf] %v712_v50  ;;  %v972_v54 = vsel %vm970_vm6, %v712_v50, 0.0  ;;  %v1001_v55 = vmul.f32 %v712_v50, %v712_v50 }
 0x1fb   : > { %v780_v56 = vpop.f32.mrb[0].mxu1  ;;  %v973_v52 = vadd.f32 %v972_v54, %v971_v51  ;;  %v1017_v57 = vsel %vm970_vm6, %v1000_v53, 0.0 }
 0x1fc   : > { %v781_v58 = vadd.f32 %v780_v56, %v1485_v28  ;;  %v782_v59 = vpop.f32.mrb[1].mxu1  ;;  %v1018_v60 = vsel %vm970_vm6, %v1001_v55, 0.0 }
 0x1fd   : > { %v783_v61 = vadd.f32 %v782_v59, %v1485_v28  ;;  %v1019_v62 = vadd.f32 %v1018_v60, %v1017_v57 }
 0x1fe   : > { %947 = vst [vmem:[%s1483_s27 + $0x10] sm:$0xff] %v781_v58  ;;  %v962_v63 = vadd.f32 %v961_v42, %v781_v58  ;;  %v994_v0 = vmul.f32 %v781_v58, %v781_v58 }
 0x1ff   : > { %948 = vst [vmem:[%s1483_s27 + $0x18] sm:$0xff] %v783_v61  ;;  %v995_v1 = vmul.f32 %v783_v61, %v783_v61  ;;  %v786_v2 = vpop.f32.mrb[2].mxu1 }
 0x200   : > { %v1009_v38 = vadd.f32 %v1008_v49, %v994_v0  ;;  %v963_v29 = vadd.f32 %v962_v63, %v783_v61  ;;  %v787_v4 = vadd.f32 %v786_v2, %v1489_v3  ;;  %v788_v5 = vpop.f32.mrb[3].mxu1 }
 0x201   : > { %v789_v6 = vadd.f32 %v788_v5, %v1489_v3 }
 0x202   : > { %v1010_v7 = vadd.f32 %v1009_v38, %v995_v1  ;;  %955 = vst [vmem:[%s1483_s27 + $0x50] sm:$0xf] %v787_v4  ;;  %v974_v9 = vsel %vm970_vm6, %v787_v4, 0.0  ;;  %v1002_v8 = vmul.f32 %v787_v4, %v787_v4 }
 0x203   : > { %v975_v10 = vadd.f32 %v974_v9, %v973_v52  ;;  %956 = vst [vmem:[%s1483_s27 + $0x58] sm:$0xf] %v789_v6  ;;  %v976_v11 = vsel %vm970_vm6, %v789_v6, 0.0  ;;  %v1003_v12 = vmul.f32 %v789_v6, %v789_v6  ;;  %v857_v13 = vpop.f32.mrb[4].mxu0 }
 0x204   : > { %v1020_v14 = vsel %vm970_vm6, %v1002_v8, 0.0  ;;  %v858_v15 = vadd.f32 %v857_v13, %v1485_v28  ;;  %v859_v16 = vpop.f32.mrb[5].mxu0 }
 0x205   : > { %v1021_v17 = vadd.f32 %v1020_v14, %v1019_v62  ;;  %v977_v18 = vadd.f32 %v976_v11, %v975_v10  ;;  %v1022_v19 = vsel %vm970_vm6, %v1003_v12, 0.0  ;;  %v860_v20 = vadd.f32 %v859_v16, %v1485_v28 }
 0x206   : > { %949 = vst [vmem:[%s1483_s27 + $0x20] sm:$0xff] %v858_v15  ;;  %v964_v21 = vadd.f32 %v963_v29, %v858_v15  ;;  %v996_v22 = vmul.f32 %v858_v15, %v858_v15 }
 0x207   : > { %v1023_v23 = vadd.f32 %v1022_v19, %v1021_v17  ;;  %950 = vst [vmem:[%s1483_s27 + $0x28] sm:$0xff] %v860_v20  ;;  %v997_v25 = vmul.f32 %v860_v20, %v860_v20  ;;  %v863_v24 = vpop.f32.mrb[6].mxu0  ;;  %v934_v44 = vpop.f32.mrb[4].mxu1 }
 0x208   : > { %v1011_v26 = vadd.f32 %v1010_v7, %v996_v22  ;;  %v965_v27 = vadd.f32 %v964_v21, %v860_v20  ;;  %v864_v48 = vadd.f32 %v863_v24, %v1489_v3  ;;  %v935_v30 = vadd.f32 %v934_v44, %v1485_v28  ;;  %v865_v31 = vpop.f32.mrb[7].mxu0  ;;  %v936_v33 = vpop.f32.mrb[5].mxu1 }
 0x209   : > { %v866_v34 = vadd.f32 %v865_v31, %v1489_v3  ;;  %v937_v35 = vadd.f32 %v936_v33, %v1485_v28 }
 0x20a   : > { %957 = vst [vmem:[%s1483_s27 + $0x60] sm:$0xf] %v864_v48  ;;  %v978_v32 = vsel %vm970_vm6, %v864_v48, 0.0  ;;  %v1004_v36 = vmul.f32 %v864_v48, %v864_v48  ;;  %951 = vst [vmem:[%s1483_s27 + $0x30] sm:$0xff] %v935_v30  ;;  %v998_v37 = vmul.f32 %v935_v30, %v935_v30  ;;  %v966_v39 = vadd.f32 %v965_v27, %v935_v30 }
 0x20b   : > { %v979_v40 = vadd.f32 %v978_v32, %v977_v18  ;;  %958 = vst [vmem:[%s1483_s27 + $0x68] sm:$0xf] %v866_v34  ;;  %v980_v41 = vsel %vm970_vm6, %v866_v34, 0.0  ;;  %v1005_v42 = vmul.f32 %v866_v34, %v866_v34  ;;  %952 = vst [vmem:[%s1483_s27 + $0x38] sm:$0xff] %v937_v35  ;;  %v940_v43 = vpop.f32.mrb[6].mxu1  ;;  %v999_v45 = vmul.f32 %v937_v35, %v937_v35 }
 0x20c   : > { %v1024_v46 = vsel %vm970_vm6, %v1004_v36, 0.0  ;;  %v941_v28 = vadd.f32 %v940_v43, %v1489_v3  ;;  %v942_v47 = vpop.f32.mrb[7].mxu1  ;;  %v967_v49 = vadd.f32 %v966_v39, %v937_v35  ;;  %v1012_v50 = vadd.f32 %v1011_v26, %v997_v25 }
 0x20d   : > { %v943_v51 = vadd.f32 %v942_v47, %v1489_v3  ;;  %v981_v53 = vadd.f32 %v980_v41, %v979_v40  ;;  %v1025_v54 = vadd.f32 %v1024_v46, %v1023_v23  ;;  %v1026_v55 = vsel %vm970_vm6, %v1005_v42, 0.0 }
 0x20e   : > { %959 = vst [vmem:[%s1483_s27 + $0x70] sm:$0xf] %v941_v28  ;;  %v1006_v56 = vmul.f32 %v941_v28, %v941_v28  ;;  %968 = vadd.xlane.f32.xlu1 %v967_v49  ;;  %v982_v52 = vsel %vm970_vm6, %v941_v28, 0.0  ;;  %v1013_v57 = vadd.f32 %v1012_v50, %v998_v37 }
 0x20f   : > { %960 = vst [vmem:[%s1483_s27 + $0x78] sm:$0xf] %v943_v51  ;;  %v983_v58 = vadd.f32 %v982_v52, %v981_v53  ;;  %v984_v59 = vsel %vm970_vm6, %v943_v51, 0.0  ;;  %v1007_v60 = vmul.f32 %v943_v51, %v943_v51  ;;  %v1027_v61 = vadd.f32 %v1026_v55, %v1025_v54 }
 0x210   : > { %v1028_v62 = vsel %vm970_vm6, %v1006_v56, 0.0  ;;  %v1014_v3 = vadd.f32 %v1013_v57, %v999_v45 }
 0x211   : > { %v985_v63 = vadd.f32 %v984_v59, %v983_v58  ;;  %v1029_v0 = vadd.f32 %v1028_v62, %v1027_v61  ;;  %v1030_v1 = vsel %vm970_vm6, %v1007_v60, 0.0 }
 0x213   : > { %986 = vadd.xlane.f32.xlu0 %v985_v63  ;;  %v1031_v2 = vadd.f32 %v1030_v1, %v1029_v0 }
 0x215   : > { %1032 = vadd.xlane.f32.xlu1 %v1031_v2 }
 0x217   : > { %1015 = vadd.xlane.f32.xlu0 %v1014_v3 }
 0x29b   : > { %v969_v38 = vpop.xlane.xlu1 %968 }
 0x29c   : > { %989 = vst.msk [vmem:[%s298_s8] sm:$0xff] %vm988_vm7, %v969_v38 }
 0x2a0   : > { %v987_v29 = vpop.xlane.xlu0 %986 }
 0x2a1   : > { %991 = vst.msk [vmem:[%s298_s8 + $0x8] sm:$0xf] %vm990_vm8, %v987_v29 }
 0x2a2   : > { %v1033_v4 = vpop.xlane.xlu1 %1032 }
 0x2a3   : > { %1035 = vst.msk [vmem:[%s303_s11 + $0x8] sm:$0xf] %vm990_vm8, %v1033_v4 }
 0x2a4   : > { %v1016_v5 = vpop.xlane.xlu0 %1015 }
 0x2a5   : > { %1034 = vst.msk [vmem:[%s303_s11] sm:$0xff] %vm988_vm7, %v1016_v5 }
 0x2a6 PF: > { %s18_s24 = sadd.s32 1, %s1263_s24  }
 0x2a7   : > { %p15_p4 = scmp.ge.s32.totalorder %s18_s24, 4  }
 0x2a9   :  { %17 = sbr.rel (!%p15_p4) target bundleno = 1 (0x1), region = 94 }

</bundles_post_ra>
